<compile_context>
chip_gen: v5e
topology: v5e:2x2
jax: 0.10.0
libtpu: 0.0.40
codegen_flags: <defaults>
</compile_context>

<pallas_src>
import jax
import jax.numpy as jnp
import numpy as np
from jax import lax
from jax.experimental import pallas as pl
from jax.experimental.pallas import tpu as pltpu

_SUBLANE_PACK = 16   # pad the bottleneck width up to this (bf16 sublane packing), not 128


def _bottleneck_kernel(xt_ref, xm_ref, xb_ref, w1_ref, b1_ref, w2_ref, b2_ref,
                       w3_ref, b3_ref, out_ref, t1_ref):
    """One (batch, row-block) grid step of the fused Bottleneck forward."""
    pad = xt_ref.shape[1]            # = dilation
    TH = xm_ref.shape[1]
    W = xm_ref.shape[2]
    Cin = xm_ref.shape[3]
    width = w1_ref.shape[1]          # sublane-padded bottleneck width
    Cout = w3_ref.shape[1]
    S = TH + 2 * pad                 # scratch rows = output rows + top/bottom halo
    Wp = W + 2 * pad                 # scratch cols = image cols + left/right zero pad
    r = pl.program_id(1)
    nr = pl.num_programs(1)

    # ---- conv1 (1x1) + bn1 + relu, streamed straight from the input refs ------------
    def conv1_rows(x_blk):
        rows = x_blk.shape[0]
        t = jnp.dot(x_blk.astype(jnp.bfloat16).reshape(rows * W, Cin), w1_ref[...],
                    preferred_element_type=jnp.float32)
        return jnp.maximum(t + b1_ref[...], 0.0).reshape(rows, W, width)

    # conv2's zero padding: left/right border columns of the scratch are zero.
    # Rewritten every grid step -> megacore-safe, no cross-step staleness.
    zcol = jnp.zeros((S, pad, width), jnp.float32)
    t1_ref[:, :pad, :] = zcol
    t1_ref[:, Wp - pad:, :] = zcol

    # The clamped halo BlockSpecs fetch in-image rows even when the true halo lies
    # outside the image (first / last row block); zero those rows (conv2 zero padding).
    top_valid = jnp.where(r > 0, 1.0, 0.0)
    bot_valid = jnp.where(r < nr - 1, 1.0, 0.0)

    t1_ref[:pad, pad:pad + W, :] = conv1_rows(xt_ref[0]) * top_valid
    t1_ref[pad:pad + TH, pad:pad + W, :] = conv1_rows(xm_ref[0])
    t1_ref[pad + TH:, pad:pad + W, :] = conv1_rows(xb_ref[0]) * bot_valid

    # ---- conv2 (3x3, stride=1, dilation) + bn2 + relu: 9 accumulated K=width dots ----
    # Taps are read directly from the padded scratch; no im2col patches buffer.
    acc = jnp.zeros((TH * W, width), jnp.float32)
    for kh in range(3):
        for kw in range(3):
            tap = t1_ref[kh * pad:kh * pad + TH, kw * pad:kw * pad + W, :]
            acc = acc + jnp.dot(tap.reshape(TH * W, width).astype(jnp.bfloat16),
                                w2_ref[kh, kw], preferred_element_type=jnp.float32)
    t2 = jnp.maximum(acc + b2_ref[...], 0.0)

    # ---- conv3 (1x1) + bn3 + identity residual + relu --------------------------------
    t3 = jnp.dot(t2.astype(jnp.bfloat16), w3_ref[...],
                 preferred_element_type=jnp.float32) + b3_ref[...]
    ident = xm_ref[0].astype(jnp.float32).reshape(TH * W, Cout)   # offset-free re-read
    out_ref[0] = jnp.maximum(t3 + ident, 0.0).reshape(TH, W, Cout).astype(out_ref.dtype)


def _pick_row_block(H, pad, target_rows=16):
    """Largest TH <= target_rows with H % TH == 0 and TH % dilation == 0."""
    cands = [th for th in range(pad, H + 1, pad) if H % th == 0]
    if not cands:
        raise ValueError("H must have a divisor that is a multiple of dilation")
    small = [th for th in cands if th <= target_rows]
    return max(small) if small else min(cands)


def bottleneck_forward(x, params, *, stride=1, dilation=1, row_block=None):
    """Fused Bottleneck forward (eval-mode BN), NHWC layout.

    x: (N, H, W, Cin) float32.
    params: (w1, s1, b1, w2, s2, b2, w3, s3, b3) with
      w1: (Cin, width), w2: (3, 3, width, width) HWIO, w3: (width, Cout),
      s*/b*: per-channel folded BN scale/bias (1-D).
    """
    N, H, W, Cin = x.shape
    w1, s1, b1, w2, s2, b2, w3, s3, b3 = params
    width = w1.shape[1]
    Cout = w3.shape[1]
    pad = dilation
    # downsample=None in this module configuration => identity residual.
    assert stride == 1 and Cin == Cout, \
        "identity residual path only (stride=1, downsample=None, Cin == planes*4)"

    TH = row_block if row_block is not None else _pick_row_block(H, pad)
    assert H % TH == 0 and TH % pad == 0, \
        "row_block must divide H and be a multiple of dilation"
    R = H // TH
    RB = TH // pad            # halo blocks (of `pad` rows) per row block
    HB = H // pad             # total halo blocks along H
    S = TH + 2 * pad
    Wp = W + 2 * pad

    # Pad the bottleneck width only to a bf16-sublane-pack multiple (NOT to 128: zero
    # rows in conv2's K dimension would burn real MXU cycles for width=64 stages).
    width_p = -(-width // _SUBLANE_PACK) * _SUBLANE_PACK

    # Fold eval-mode BN scales into the conv weights (per-channel bias stays in-kernel);
    # MXU operands pre-cast to bf16, biases stay f32.
    w1f = jnp.zeros((Cin, width_p), jnp.float32).at[:, :width].set(
        w1 * s1[None, :]).astype(jnp.bfloat16)
    w2f = jnp.zeros((3, 3, width_p, width_p), jnp.float32).at[:, :, :width, :width].set(
        w2 * s2[None, None, None, :]).astype(jnp.bfloat16)
    w3f = jnp.zeros((width_p, Cout), jnp.float32).at[:width, :].set(
        w3 * s3[None, :]).astype(jnp.bfloat16)
    b1f = jnp.zeros((1, width_p), jnp.float32).at[:, :width].set(b1.reshape(1, -1))
    b2f = jnp.zeros((1, width_p), jnp.float32).at[:, :width].set(b2.reshape(1, -1))
    b3f = b3.reshape(1, Cout).astype(jnp.float32)

    flops = 2 * N * H * W * (Cin * width_p + 9 * width_p * width_p + width_p * Cout)
    bytes_accessed = int(
        x.size * x.dtype.itemsize * (1.0 + 2.0 * pad / TH)     # x + duplicated halo rows
        + N * H * W * Cout * x.dtype.itemsize                  # output
        + 2 * (w1f.size + w2f.size + w3f.size)                 # bf16 weights
        + 4 * (b1f.size + b2f.size + b3f.size))

    out = pl.pallas_call(
        _bottleneck_kernel,
        out_shape=jax.ShapeDtypeStruct((N, H, W, Cout), x.dtype),
        grid=(N, R),
        in_specs=[
            # top halo: `pad` rows just above the block (clamped at the image top)
            pl.BlockSpec((1, pad, W, Cin),
                         lambda n, r: (n, jnp.maximum(r * RB - 1, 0), 0, 0)),
            # current TH-row block
            pl.BlockSpec((1, TH, W, Cin), lambda n, r: (n, r, 0, 0)),
            # bottom halo: `pad` rows just below the block (clamped at the image bottom)
            pl.BlockSpec((1, pad, W, Cin),
                         lambda n, r: (n, jnp.minimum((r + 1) * RB, HB - 1), 0, 0)),
            pl.BlockSpec(w1f.shape, lambda n, r: (0, 0)),
            pl.BlockSpec(b1f.shape, lambda n, r: (0, 0)),
            pl.BlockSpec(w2f.shape, lambda n, r: (0, 0, 0, 0)),
            pl.BlockSpec(b2f.shape, lambda n, r: (0, 0)),
            pl.BlockSpec(w3f.shape, lambda n, r: (0, 0)),
            pl.BlockSpec(b3f.shape, lambda n, r: (0, 0)),
        ],
        # NHWC output tile; for real ResNet channel counts (>=128) the C-last store is
        # lane-dense.
        out_specs=pl.BlockSpec((1, TH, W, Cout), lambda n, r: (n, r, 0, 0)),
        scratch_shapes=[pltpu.VMEM((S, Wp, width_p), jnp.float32)],
        compiler_params=pltpu.CompilerParams(
            dimension_semantics=("parallel", "parallel"),
            vmem_limit_bytes=64 * 1024 * 1024),
        cost_estimate=pl.CostEstimate(flops=flops, transcendentals=0,
                                      bytes_accessed=bytes_accessed),
    )(x, x, x, w1f, b1f, w2f, b2f, w3f, b3f)
    return out


def _fold_bn(gamma, beta, mean, var, eps=1e-5):
    scale = gamma / jnp.sqrt(var + eps)
    bias = beta - mean * scale
    return scale.astype(jnp.float32), bias.astype(jnp.float32)


def _make_params(key, inplanes, planes, groups=1, base_width=64):
    width = int(planes * (base_width / 64.0)) * groups
    cout = planes * 4  # expansion
    ks = jax.random.split(key, 6)
    w1 = jax.random.normal(ks[0], (inplanes, width), jnp.float32) * 0.1
    w2 = jax.random.normal(ks[1], (3, 3, width, width), jnp.float32) * 0.1
    w3 = jax.random.normal(ks[2], (width, cout), jnp.float32) * 0.1

    def bn(k, c):
        k1, k2, k3, k4 = jax.random.split(k, 4)
        gamma = jax.random.uniform(k1, (c,), jnp.float32, 0.5, 1.5)
        beta = jax.random.normal(k2, (c,), jnp.float32) * 0.1
        mean = jax.random.normal(k3, (c,), jnp.float32) * 0.1
        var = jax.random.uniform(k4, (c,), jnp.float32, 0.5, 1.5)
        return _fold_bn(gamma, beta, mean, var)

    s1, b1 = bn(ks[3], width)
    s2, b2 = bn(ks[4], width)
    s3, b3 = bn(ks[5], cout)
    return (w1, s1, b1, w2, s2, b2, w3, s3, b3)


def _reference_forward(x, params, *, stride=1, dilation=1):
    """Pure-JAX f32 (XLA conv) reference of the same eval-mode Bottleneck forward, NHWC."""
    w1, s1, b1, w2, s2, b2, w3, s3, b3 = params
    dn = ("NHWC", "HWIO", "NHWC")

    def bn(t, s, b):
        return t * s.reshape(1, 1, 1, -1) + b.reshape(1, 1, 1, -1)

    t = lax.conv_general_dilated(x, w1.reshape(1, 1, *w1.shape), (1, 1), "VALID",
                                 dimension_numbers=dn)
    t = jnp.maximum(bn(t, s1, b1), 0.0)
    t = lax.conv_general_dilated(t, w2, (stride, stride),
                                 [(dilation, dilation), (dilation, dilation)],
                                 rhs_dilation=(dilation, dilation),
                                 dimension_numbers=dn)
    t = jnp.maximum(bn(t, s2, b2), 0.0)
    t = lax.conv_general_dilated(t, w3.reshape(1, 1, *w3.shape), (1, 1), "VALID",
                                 dimension_numbers=dn)
    t = bn(t, s3, b3)
    return jnp.maximum(t + x, 0.0)


if __name__ == "__main__":
    key = jax.random.PRNGKey(0)
    kx, kp, kx2, kp2 = jax.random.split(key, 4)

    # Test 1: module defaults (inplanes=16, planes=4 -> width=4, Cout=16), dilation=1.
    # row_block=8 -> 2 row blocks so the clamped-halo + boundary-masking path runs.
    N, H, W = 2, 16, 16
    inplanes, planes = 16, 4
    x = jax.random.normal(kx, (N, H, W, inplanes), jnp.float32)   # NHWC
    params = _make_params(kp, inplanes, planes)
    out = jax.block_until_ready(bottleneck_forward(x, params, dilation=1, row_block=8))
    ref = jax.block_until_ready(_reference_forward(x, params, dilation=1))
    np.testing.assert_allclose(np.asarray(out), np.asarray(ref), rtol=3e-2, atol=3e-2)

    # Test 2: DeepLab-style dilated branch (dilation=2), slightly wider channels.
    x2 = jax.random.normal(kx2, (1, 16, 16, 32), jnp.float32)
    params2 = _make_params(kp2, 32, 8)                             # width=8, Cout=32
    out2 = jax.block_until_ready(bottleneck_forward(x2, params2, dilation=2, row_block=8))
    ref2 = jax.block_until_ready(_reference_forward(x2, params2, dilation=2))
    np.testing.assert_allclose(np.asarray(out2), np.asarray(ref2), rtol=3e-2, atol=3e-2)

    # bf16 MXU operands (f32 accumulation) vs pure-f32 reference -> loose-ish tolerance.
    print("KERNEL_OK")
</pallas_src>

<mosaic_0001>
module attributes {stable_mosaic.version = 11 : i64} {
  func.func @_bottleneck_kernel(%arg0: i32, %arg1: i32, %arg2: memref<1x1x16x16xf32, #tpu.memory_space<vmem>>, %arg3: memref<1x8x16x16xf32, #tpu.memory_space<vmem>>, %arg4: memref<1x1x16x16xf32, #tpu.memory_space<vmem>>, %arg5: memref<16x16xbf16, #tpu.memory_space<vmem>>, %arg6: memref<1x16xf32, #tpu.memory_space<vmem>>, %arg7: memref<3x3x16x16xbf16, #tpu.memory_space<vmem>>, %arg8: memref<1x16xf32, #tpu.memory_space<vmem>>, %arg9: memref<16x16xbf16, #tpu.memory_space<vmem>>, %arg10: memref<1x16xf32, #tpu.memory_space<vmem>>, %arg11: memref<1x8x16x16xf32, #tpu.memory_space<vmem>>, %arg12: memref<10x18x16xf32, #tpu.memory_space<vmem>>) attributes {dimension_semantics = [#tpu.dimension_semantics<parallel>, #tpu.dimension_semantics<parallel>], iteration_bounds = array<i64: 2, 2>, scalar_prefetch = 0 : i64, scratch_operands = 1 : i64, tpu.core_type = #tpu.core_type<tc>, window_params = [{transform_indices = @transform_0, window_bounds = array<i64: 1, 1, 16, 16>}, {transform_indices = @transform_1, window_bounds = array<i64: 1, 8, 16, 16>}, {transform_indices = @transform_2, window_bounds = array<i64: 1, 1, 16, 16>}, {pipeline_mode = #tpu.pipeline_mode<synchronous>, transform_indices = @transform_3, window_bounds = array<i64: 16, 16>}, {pipeline_mode = #tpu.pipeline_mode<synchronous>, transform_indices = @transform_4, window_bounds = array<i64: 1, 16>}, {pipeline_mode = #tpu.pipeline_mode<synchronous>, transform_indices = @transform_5, window_bounds = array<i64: 3, 3, 16, 16>}, {pipeline_mode = #tpu.pipeline_mode<synchronous>, transform_indices = @transform_6, window_bounds = array<i64: 1, 16>}, {pipeline_mode = #tpu.pipeline_mode<synchronous>, transform_indices = @transform_7, window_bounds = array<i64: 16, 16>}, {pipeline_mode = #tpu.pipeline_mode<synchronous>, transform_indices = @transform_8, window_bounds = array<i64: 1, 16>}, {transform_indices = @transform_9, window_bounds = array<i64: 1, 8, 16, 16>}]} {
    %cst = arith.constant 0.000000e+00 : f32
    %0 = vector.broadcast %cst : f32 to vector<10x1x16xf32>
    %c0 = arith.constant 0 : index
    %c0_0 = arith.constant 0 : index
    %c0_1 = arith.constant 0 : index
    %1 = vector.load %arg12[%c0, %c0_0, %c0_1] : memref<10x18x16xf32, #tpu.memory_space<vmem>>, vector<10x1x16xf32>
    tpu.vector_store %arg12[%c0, %c0_0, %c0_1], %0 {strides = array<i32>} : memref<10x18x16xf32, #tpu.memory_space<vmem>>, vector<10x1x16xf32>,
    %c0_2 = arith.constant 0 : index
    %c17 = arith.constant 17 : index
    %c0_3 = arith.constant 0 : index
    %2 = vector.load %arg12[%c0_2, %c17, %c0_3] : memref<10x18x16xf32, #tpu.memory_space<vmem>>, vector<10x1x16xf32>
    tpu.vector_store %arg12[%c0_2, %c17, %c0_3], %0 {strides = array<i32>} : memref<10x18x16xf32, #tpu.memory_space<vmem>>, vector<10x1x16xf32>,
    %c0_i32 = arith.constant 0 : i32
    %3 = arith.cmpi sgt, %arg1, %c0_i32 : i32
    %cst_4 = arith.constant 1.000000e+00 : f32
    %cst_5 = arith.constant 0.000000e+00 : f32
    %4 = arith.select %3, %cst_4, %cst_5 : f32
    %c1_i32 = arith.constant 1 : i32
    %5 = arith.cmpi slt, %arg1, %c1_i32 : i32
    %cst_6 = arith.constant 1.000000e+00 : f32
    %cst_7 = arith.constant 0.000000e+00 : f32
    %6 = arith.select %5, %cst_6, %cst_7 : f32
    %c0_8 = arith.constant 0 : index
    %c0_9 = arith.constant 0 : index
    %c0_10 = arith.constant 0 : index
    %c0_11 = arith.constant 0 : index
    %7 = vector.load %arg2[%c0_8, %c0_9, %c0_10, %c0_11] : memref<1x1x16x16xf32, #tpu.memory_space<vmem>>, vector<1x1x16x16xf32>
    %8 = vector.shape_cast %7 : vector<1x1x16x16xf32> to vector<1x16x16xf32>
    %9 = arith.truncf %8 : vector<1x16x16xf32> to vector<1x16x16xbf16>
    %10 = vector.shape_cast %9 : vector<1x16x16xbf16> to vector<16x16xbf16>
    %c0_12 = arith.constant 0 : index
    %c0_13 = arith.constant 0 : index
    %11 = vector.load %arg5[%c0_12, %c0_13] : memref<16x16xbf16, #tpu.memory_space<vmem>>, vector<16x16xbf16>
    %cst_14 = arith.constant dense<0.000000e+00> : vector<16x16xf32>
    %12 = tpu.matmul %10, %11, %cst_14 {dimension_numbers = #tpu.dot_dimension_numbers<[1], [0], [0], [1], [0, 0, 1, 1], [], []>} : vector<16x16xbf16>, vector<16x16xbf16>, vector<16x16xf32> -> vector<16x16xf32>
    %c0_15 = arith.constant 0 : index
    %c0_16 = arith.constant 0 : index
    %13 = vector.load %arg6[%c0_15, %c0_16] : memref<1x16xf32, #tpu.memory_space<vmem>>, vector<1x16xf32>
    %14 = vector.broadcast %13 : vector<1x16xf32> to vector<16x16xf32>
    %15 = arith.addf %12, %14 : vector<16x16xf32>
    %cst_17 = arith.constant 0.000000e+00 : f32
    %16 = vector.broadcast %cst_17 : f32 to vector<16x16xf32>
    %17 = arith.maximumf %15, %16 : vector<16x16xf32>
    %18 = vector.shape_cast %17 : vector<16x16xf32> to vector<1x16x16xf32>
    %19 = vector.broadcast %4 : f32 to vector<1x16x16xf32>
    %20 = arith.mulf %18, %19 : vector<1x16x16xf32>
    %c0_18 = arith.constant 0 : index
    %c1 = arith.constant 1 : index
    %c0_19 = arith.constant 0 : index
    %21 = vector.load %arg12[%c0_18, %c1, %c0_19] : memref<10x18x16xf32, #tpu.memory_space<vmem>>, vector<1x16x16xf32>
    tpu.vector_store %arg12[%c0_18, %c1, %c0_19], %20 {strides = array<i32>} : memref<10x18x16xf32, #tpu.memory_space<vmem>>, vector<1x16x16xf32>,
    %c0_20 = arith.constant 0 : index
    %c0_21 = arith.constant 0 : index
    %c0_22 = arith.constant 0 : index
    %c0_23 = arith.constant 0 : index
    %22 = vector.load %arg3[%c0_20, %c0_21, %c0_22, %c0_23] : memref<1x8x16x16xf32, #tpu.memory_space<vmem>>, vector<1x8x16x16xf32>
    %23 = vector.shape_cast %22 : vector<1x8x16x16xf32> to vector<8x16x16xf32>
    %24 = arith.truncf %23 : vector<8x16x16xf32> to vector<8x16x16xbf16>
    %25 = vector.shape_cast %24 : vector<8x16x16xbf16> to vector<128x16xbf16>
    %c0_24 = arith.constant 0 : index
    %c0_25 = arith.constant 0 : index
    %26 = vector.load %arg5[%c0_24, %c0_25] : memref<16x16xbf16, #tpu.memory_space<vmem>>, vector<16x16xbf16>
    %cst_26 = arith.constant dense<0.000000e+00> : vector<128x16xf32>
    %27 = tpu.matmul %25, %26, %cst_26 {dimension_numbers = #tpu.dot_dimension_numbers<[1], [0], [0], [1], [0, 0, 1, 1], [], []>} : vector<128x16xbf16>, vector<16x16xbf16>, vector<128x16xf32> -> vector<128x16xf32>
    %c0_27 = arith.constant 0 : index
    %c0_28 = arith.constant 0 : index
    %28 = vector.load %arg6[%c0_27, %c0_28] : memref<1x16xf32, #tpu.memory_space<vmem>>, vector<1x16xf32>
    %29 = vector.broadcast %28 : vector<1x16xf32> to vector<128x16xf32>
    %30 = arith.addf %27, %29 : vector<128x16xf32>
    %cst_29 = arith.constant 0.000000e+00 : f32
    %31 = vector.broadcast %cst_29 : f32 to vector<128x16xf32>
    %32 = arith.maximumf %30, %31 : vector<128x16xf32>
    %33 = vector.shape_cast %32 : vector<128x16xf32> to vector<8x16x16xf32>
    %c1_30 = arith.constant 1 : index
    %c1_31 = arith.constant 1 : index
    %c0_32 = arith.constant 0 : index
    %34 = vector.load %arg12[%c1_30, %c1_31, %c0_32] : memref<10x18x16xf32, #tpu.memory_space<vmem>>, vector<8x16x16xf32>
    tpu.vector_store %arg12[%c1_30, %c1_31, %c0_32], %33 {strides = array<i32>} : memref<10x18x16xf32, #tpu.memory_space<vmem>>, vector<8x16x16xf32>,
    %c0_33 = arith.constant 0 : index
    %c0_34 = arith.constant 0 : index
    %c0_35 = arith.constant 0 : index
    %c0_36 = arith.constant 0 : index
    %35 = vector.load %arg4[%c0_33, %c0_34, %c0_35, %c0_36] : memref<1x1x16x16xf32, #tpu.memory_space<vmem>>, vector<1x1x16x16xf32>
    %36 = vector.shape_cast %35 : vector<1x1x16x16xf32> to vector<1x16x16xf32>
    %37 = arith.truncf %36 : vector<1x16x16xf32> to vector<1x16x16xbf16>
    %38 = vector.shape_cast %37 : vector<1x16x16xbf16> to vector<16x16xbf16>
    %c0_37 = arith.constant 0 : index
    %c0_38 = arith.constant 0 : index
    %39 = vector.load %arg5[%c0_37, %c0_38] : memref<16x16xbf16, #tpu.memory_space<vmem>>, vector<16x16xbf16>
    %cst_39 = arith.constant dense<0.000000e+00> : vector<16x16xf32>
    %40 = tpu.matmul %38, %39, %cst_39 {dimension_numbers = #tpu.dot_dimension_numbers<[1], [0], [0], [1], [0, 0, 1, 1], [], []>} : vector<16x16xbf16>, vector<16x16xbf16>, vector<16x16xf32> -> vector<16x16xf32>
    %c0_40 = arith.constant 0 : index
    %c0_41 = arith.constant 0 : index
    %41 = vector.load %arg6[%c0_40, %c0_41] : memref<1x16xf32, #tpu.memory_space<vmem>>, vector<1x16xf32>
    %42 = vector.broadcast %41 : vector<1x16xf32> to vector<16x16xf32>
    %43 = arith.addf %40, %42 : vector<16x16xf32>
    %cst_42 = arith.constant 0.000000e+00 : f32
    %44 = vector.broadcast %cst_42 : f32 to vector<16x16xf32>
    %45 = arith.maximumf %43, %44 : vector<16x16xf32>
    %46 = vector.shape_cast %45 : vector<16x16xf32> to vector<1x16x16xf32>
    %47 = vector.broadcast %6 : f32 to vector<1x16x16xf32>
    %48 = arith.mulf %46, %47 : vector<1x16x16xf32>
    %c9 = arith.constant 9 : index
    %c1_43 = arith.constant 1 : index
    %c0_44 = arith.constant 0 : index
    %49 = vector.load %arg12[%c9, %c1_43, %c0_44] : memref<10x18x16xf32, #tpu.memory_space<vmem>>, vector<1x16x16xf32>
    tpu.vector_store %arg12[%c9, %c1_43, %c0_44], %48 {strides = array<i32>} : memref<10x18x16xf32, #tpu.memory_space<vmem>>, vector<1x16x16xf32>,
    %cst_45 = arith.constant 0.000000e+00 : f32
    %50 = vector.broadcast %cst_45 : f32 to vector<128x16xf32>
    %c0_46 = arith.constant 0 : index
    %c0_47 = arith.constant 0 : index
    %c0_48 = arith.constant 0 : index
    %51 = vector.load %arg12[%c0_46, %c0_47, %c0_48] : memref<10x18x16xf32, #tpu.memory_space<vmem>>, vector<8x16x16xf32>
    %52 = vector.shape_cast %51 : vector<8x16x16xf32> to vector<128x16xf32>
    %53 = arith.truncf %52 : vector<128x16xf32> to vector<128x16xbf16>
    %c0_49 = arith.constant 0 : index
    %c0_50 = arith.constant 0 : index
    %c0_51 = arith.constant 0 : index
    %c0_52 = arith.constant 0 : index
    %54 = vector.load %arg7[%c0_49, %c0_50, %c0_51, %c0_52] : memref<3x3x16x16xbf16, #tpu.memory_space<vmem>>, vector<1x1x16x16xbf16>
    %55 = vector.shape_cast %54 : vector<1x1x16x16xbf16> to vector<16x16xbf16>
    %cst_53 = arith.constant dense<0.000000e+00> : vector<128x16xf32>
    %56 = tpu.matmul %53, %55, %cst_53 {dimension_numbers = #tpu.dot_dimension_numbers<[1], [0], [0], [1], [0, 0, 1, 1], [], []>} : vector<128x16xbf16>, vector<16x16xbf16>, vector<128x16xf32> -> vector<128x16xf32>
    %57 = arith.addf %50, %56 : vector<128x16xf32>
    %c0_54 = arith.constant 0 : index
    %c1_55 = arith.constant 1 : index
    %c0_56 = arith.constant 0 : index
    %58 = vector.load %arg12[%c0_54, %c1_55, %c0_56] : memref<10x18x16xf32, #tpu.memory_space<vmem>>, vector<8x16x16xf32>
    %59 = vector.shape_cast %58 : vector<8x16x16xf32> to vector<128x16xf32>
    %60 = arith.truncf %59 : vector<128x16xf32> to vector<128x16xbf16>
    %c0_57 = arith.constant 0 : index
    %c1_58 = arith.constant 1 : index
    %c0_59 = arith.constant 0 : index
    %c0_60 = arith.constant 0 : index
    %61 = vector.load %arg7[%c0_57, %c1_58, %c0_59, %c0_60] : memref<3x3x16x16xbf16, #tpu.memory_space<vmem>>, vector<1x1x16x16xbf16>
    %62 = vector.shape_cast %61 : vector<1x1x16x16xbf16> to vector<16x16xbf16>
    %cst_61 = arith.constant dense<0.000000e+00> : vector<128x16xf32>
    %63 = tpu.matmul %60, %62, %cst_61 {dimension_numbers = #tpu.dot_dimension_numbers<[1], [0], [0], [1], [0, 0, 1, 1], [], []>} : vector<128x16xbf16>, vector<16x16xbf16>, vector<128x16xf32> -> vector<128x16xf32>
    %64 = arith.addf %57, %63 : vector<128x16xf32>
    %c0_62 = arith.constant 0 : index
    %c2 = arith.constant 2 : index
    %c0_63 = arith.constant 0 : index
    %65 = vector.load %arg12[%c0_62, %c2, %c0_63] : memref<10x18x16xf32, #tpu.memory_space<vmem>>, vector<8x16x16xf32>
    %66 = vector.shape_cast %65 : vector<8x16x16xf32> to vector<128x16xf32>
    %67 = arith.truncf %66 : vector<128x16xf32> to vector<128x16xbf16>
    %c0_64 = arith.constant 0 : index
    %c2_65 = arith.constant 2 : index
    %c0_66 = arith.constant 0 : index
    %c0_67 = arith.constant 0 : index
    %68 = vector.load %arg7[%c0_64, %c2_65, %c0_66, %c0_67] : memref<3x3x16x16xbf16, #tpu.memory_space<vmem>>, vector<1x1x16x16xbf16>
    %69 = vector.shape_cast %68 : vector<1x1x16x16xbf16> to vector<16x16xbf16>
    %cst_68 = arith.constant dense<0.000000e+00> : vector<128x16xf32>
    %70 = tpu.matmul %67, %69, %cst_68 {dimension_numbers = #tpu.dot_dimension_numbers<[1], [0], [0], [1], [0, 0, 1, 1], [], []>} : vector<128x16xbf16>, vector<16x16xbf16>, vector<128x16xf32> -> vector<128x16xf32>
    %71 = arith.addf %64, %70 : vector<128x16xf32>
    %c1_69 = arith.constant 1 : index
    %c0_70 = arith.constant 0 : index
    %c0_71 = arith.constant 0 : index
    %72 = vector.load %arg12[%c1_69, %c0_70, %c0_71] : memref<10x18x16xf32, #tpu.memory_space<vmem>>, vector<8x16x16xf32>
    %73 = vector.shape_cast %72 : vector<8x16x16xf32> to vector<128x16xf32>
    %74 = arith.truncf %73 : vector<128x16xf32> to vector<128x16xbf16>
    %c1_72 = arith.constant 1 : index
    %c0_73 = arith.constant 0 : index
    %c0_74 = arith.constant 0 : index
    %c0_75 = arith.constant 0 : index
    %75 = vector.load %arg7[%c1_72, %c0_73, %c0_74, %c0_75] : memref<3x3x16x16xbf16, #tpu.memory_space<vmem>>, vector<1x1x16x16xbf16>
    %76 = vector.shape_cast %75 : vector<1x1x16x16xbf16> to vector<16x16xbf16>
    %cst_76 = arith.constant dense<0.000000e+00> : vector<128x16xf32>
    %77 = tpu.matmul %74, %76, %cst_76 {dimension_numbers = #tpu.dot_dimension_numbers<[1], [0], [0], [1], [0, 0, 1, 1], [], []>} : vector<128x16xbf16>, vector<16x16xbf16>, vector<128x16xf32> -> vector<128x16xf32>
    %78 = arith.addf %71, %77 : vector<128x16xf32>
    %c1_77 = arith.constant 1 : index
    %c1_78 = arith.constant 1 : index
    %c0_79 = arith.constant 0 : index
    %79 = vector.load %arg12[%c1_77, %c1_78, %c0_79] : memref<10x18x16xf32, #tpu.memory_space<vmem>>, vector<8x16x16xf32>
    %80 = vector.shape_cast %79 : vector<8x16x16xf32> to vector<128x16xf32>
    %81 = arith.truncf %80 : vector<128x16xf32> to vector<128x16xbf16>
    %c1_80 = arith.constant 1 : index
    %c1_81 = arith.constant 1 : index
    %c0_82 = arith.constant 0 : index
    %c0_83 = arith.constant 0 : index
    %82 = vector.load %arg7[%c1_80, %c1_81, %c0_82, %c0_83] : memref<3x3x16x16xbf16, #tpu.memory_space<vmem>>, vector<1x1x16x16xbf16>
    %83 = vector.shape_cast %82 : vector<1x1x16x16xbf16> to vector<16x16xbf16>
    %cst_84 = arith.constant dense<0.000000e+00> : vector<128x16xf32>
    %84 = tpu.matmul %81, %83, %cst_84 {dimension_numbers = #tpu.dot_dimension_numbers<[1], [0], [0], [1], [0, 0, 1, 1], [], []>} : vector<128x16xbf16>, vector<16x16xbf16>, vector<128x16xf32> -> vector<128x16xf32>
    %85 = arith.addf %78, %84 : vector<128x16xf32>
    %c1_85 = arith.constant 1 : index
    %c2_86 = arith.constant 2 : index
    %c0_87 = arith.constant 0 : index
    %86 = vector.load %arg12[%c1_85, %c2_86, %c0_87] : memref<10x18x16xf32, #tpu.memory_space<vmem>>, vector<8x16x16xf32>
    %87 = vector.shape_cast %86 : vector<8x16x16xf32> to vector<128x16xf32>
    %88 = arith.truncf %87 : vector<128x16xf32> to vector<128x16xbf16>
    %c1_88 = arith.constant 1 : index
    %c2_89 = arith.constant 2 : index
    %c0_90 = arith.constant 0 : index
    %c0_91 = arith.constant 0 : index
    %89 = vector.load %arg7[%c1_88, %c2_89, %c0_90, %c0_91] : memref<3x3x16x16xbf16, #tpu.memory_space<vmem>>, vector<1x1x16x16xbf16>
    %90 = vector.shape_cast %89 : vector<1x1x16x16xbf16> to vector<16x16xbf16>
    %cst_92 = arith.constant dense<0.000000e+00> : vector<128x16xf32>
    %91 = tpu.matmul %88, %90, %cst_92 {dimension_numbers = #tpu.dot_dimension_numbers<[1], [0], [0], [1], [0, 0, 1, 1], [], []>} : vector<128x16xbf16>, vector<16x16xbf16>, vector<128x16xf32> -> vector<128x16xf32>
    %92 = arith.addf %85, %91 : vector<128x16xf32>
    %c2_93 = arith.constant 2 : index
    %c0_94 = arith.constant 0 : index
    %c0_95 = arith.constant 0 : index
    %93 = vector.load %arg12[%c2_93, %c0_94, %c0_95] : memref<10x18x16xf32, #tpu.memory_space<vmem>>, vector<8x16x16xf32>
    %94 = vector.shape_cast %93 : vector<8x16x16xf32> to vector<128x16xf32>
    %95 = arith.truncf %94 : vector<128x16xf32> to vector<128x16xbf16>
    %c2_96 = arith.constant 2 : index
    %c0_97 = arith.constant 0 : index
    %c0_98 = arith.constant 0 : index
    %c0_99 = arith.constant 0 : index
    %96 = vector.load %arg7[%c2_96, %c0_97, %c0_98, %c0_99] : memref<3x3x16x16xbf16, #tpu.memory_space<vmem>>, vector<1x1x16x16xbf16>
    %97 = vector.shape_cast %96 : vector<1x1x16x16xbf16> to vector<16x16xbf16>
    %cst_100 = arith.constant dense<0.000000e+00> : vector<128x16xf32>
    %98 = tpu.matmul %95, %97, %cst_100 {dimension_numbers = #tpu.dot_dimension_numbers<[1], [0], [0], [1], [0, 0, 1, 1], [], []>} : vector<128x16xbf16>, vector<16x16xbf16>, vector<128x16xf32> -> vector<128x16xf32>
    %99 = arith.addf %92, %98 : vector<128x16xf32>
    %c2_101 = arith.constant 2 : index
    %c1_102 = arith.constant 1 : index
    %c0_103 = arith.constant 0 : index
    %100 = vector.load %arg12[%c2_101, %c1_102, %c0_103] : memref<10x18x16xf32, #tpu.memory_space<vmem>>, vector<8x16x16xf32>
    %101 = vector.shape_cast %100 : vector<8x16x16xf32> to vector<128x16xf32>
    %102 = arith.truncf %101 : vector<128x16xf32> to vector<128x16xbf16>
    %c2_104 = arith.constant 2 : index
    %c1_105 = arith.constant 1 : index
    %c0_106 = arith.constant 0 : index
    %c0_107 = arith.constant 0 : index
    %103 = vector.load %arg7[%c2_104, %c1_105, %c0_106, %c0_107] : memref<3x3x16x16xbf16, #tpu.memory_space<vmem>>, vector<1x1x16x16xbf16>
    %104 = vector.shape_cast %103 : vector<1x1x16x16xbf16> to vector<16x16xbf16>
    %cst_108 = arith.constant dense<0.000000e+00> : vector<128x16xf32>
    %105 = tpu.matmul %102, %104, %cst_108 {dimension_numbers = #tpu.dot_dimension_numbers<[1], [0], [0], [1], [0, 0, 1, 1], [], []>} : vector<128x16xbf16>, vector<16x16xbf16>, vector<128x16xf32> -> vector<128x16xf32>
    %106 = arith.addf %99, %105 : vector<128x16xf32>
    %c2_109 = arith.constant 2 : index
    %c2_110 = arith.constant 2 : index
    %c0_111 = arith.constant 0 : index
    %107 = vector.load %arg12[%c2_109, %c2_110, %c0_111] : memref<10x18x16xf32, #tpu.memory_space<vmem>>, vector<8x16x16xf32>
    %108 = vector.shape_cast %107 : vector<8x16x16xf32> to vector<128x16xf32>
    %109 = arith.truncf %108 : vector<128x16xf32> to vector<128x16xbf16>
    %c2_112 = arith.constant 2 : index
    %c2_113 = arith.constant 2 : index
    %c0_114 = arith.constant 0 : index
    %c0_115 = arith.constant 0 : index
    %110 = vector.load %arg7[%c2_112, %c2_113, %c0_114, %c0_115] : memref<3x3x16x16xbf16, #tpu.memory_space<vmem>>, vector<1x1x16x16xbf16>
    %111 = vector.shape_cast %110 : vector<1x1x16x16xbf16> to vector<16x16xbf16>
    %cst_116 = arith.constant dense<0.000000e+00> : vector<128x16xf32>
    %112 = tpu.matmul %109, %111, %cst_116 {dimension_numbers = #tpu.dot_dimension_numbers<[1], [0], [0], [1], [0, 0, 1, 1], [], []>} : vector<128x16xbf16>, vector<16x16xbf16>, vector<128x16xf32> -> vector<128x16xf32>
    %113 = arith.addf %106, %112 : vector<128x16xf32>
    %c0_117 = arith.constant 0 : index
    %c0_118 = arith.constant 0 : index
    %114 = vector.load %arg8[%c0_117, %c0_118] : memref<1x16xf32, #tpu.memory_space<vmem>>, vector<1x16xf32>
    %115 = vector.broadcast %114 : vector<1x16xf32> to vector<128x16xf32>
    %116 = arith.addf %113, %115 : vector<128x16xf32>
    %cst_119 = arith.constant 0.000000e+00 : f32
    %117 = vector.broadcast %cst_119 : f32 to vector<128x16xf32>
    %118 = arith.maximumf %116, %117 : vector<128x16xf32>
    %119 = arith.truncf %118 : vector<128x16xf32> to vector<128x16xbf16>
    %c0_120 = arith.constant 0 : index
    %c0_121 = arith.constant 0 : index
    %120 = vector.load %arg9[%c0_120, %c0_121] : memref<16x16xbf16, #tpu.memory_space<vmem>>, vector<16x16xbf16>
    %cst_122 = arith.constant dense<0.000000e+00> : vector<128x16xf32>
    %121 = tpu.matmul %119, %120, %cst_122 {dimension_numbers = #tpu.dot_dimension_numbers<[1], [0], [0], [1], [0, 0, 1, 1], [], []>} : vector<128x16xbf16>, vector<16x16xbf16>, vector<128x16xf32> -> vector<128x16xf32>
    %c0_123 = arith.constant 0 : index
    %c0_124 = arith.constant 0 : index
    %122 = vector.load %arg10[%c0_123, %c0_124] : memref<1x16xf32, #tpu.memory_space<vmem>>, vector<1x16xf32>
    %123 = vector.broadcast %122 : vector<1x16xf32> to vector<128x16xf32>
    %124 = arith.addf %121, %123 : vector<128x16xf32>
    %c0_125 = arith.constant 0 : index
    %c0_126 = arith.constant 0 : index
    %c0_127 = arith.constant 0 : index
    %c0_128 = arith.constant 0 : index
    %125 = vector.load %arg3[%c0_125, %c0_126, %c0_127, %c0_128] : memref<1x8x16x16xf32, #tpu.memory_space<vmem>>, vector<1x8x16x16xf32>
    %126 = vector.shape_cast %125 : vector<1x8x16x16xf32> to vector<8x16x16xf32>
    %127 = vector.shape_cast %126 : vector<8x16x16xf32> to vector<128x16xf32>
    %128 = arith.addf %124, %127 : vector<128x16xf32>
    %cst_129 = arith.constant 0.000000e+00 : f32
    %129 = vector.broadcast %cst_129 : f32 to vector<128x16xf32>
    %130 = arith.maximumf %128, %129 : vector<128x16xf32>
    %131 = vector.shape_cast %130 : vector<128x16xf32> to vector<8x16x16xf32>
    %c0_130 = arith.constant 0 : index
    %c0_131 = arith.constant 0 : index
    %c0_132 = arith.constant 0 : index
    %c0_133 = arith.constant 0 : index
    %132 = vector.load %arg11[%c0_130, %c0_131, %c0_132, %c0_133] : memref<1x8x16x16xf32, #tpu.memory_space<vmem>>, vector<1x8x16x16xf32>
    %133 = vector.shape_cast %132 : vector<1x8x16x16xf32> to vector<8x16x16xf32>
    %134 = vector.shape_cast %131 : vector<8x16x16xf32> to vector<1x8x16x16xf32>
    tpu.vector_store %arg11[%c0_130, %c0_131, %c0_132, %c0_133], %134 {strides = array<i32>} : memref<1x8x16x16xf32, #tpu.memory_space<vmem>>, vector<1x8x16x16xf32>,
    return
  }
  func.func @transform_0(%arg0: i32, %arg1: i32) -> (i32, i32, i32, i32) {
    %c8_i32 = arith.constant 8 : i32
    %0 = arith.muli %arg1, %c8_i32 : i32
    %c1_i32 = arith.constant 1 : i32
    %1 = arith.subi %0, %c1_i32 : i32
    %c0_i32 = arith.constant 0 : i32
    %2 = arith.maxsi %1, %c0_i32 : i32
    %c0_i32_0 = arith.constant 0 : i32
    %c0_i32_1 = arith.constant 0 : i32
    %c0_i32_2 = arith.constant 0 : i32
    return %arg0, %2, %c0_i32_0, %c0_i32_1 : i32, i32, i32, i32
  }
  func.func @transform_1(%arg0: i32, %arg1: i32) -> (i32, i32, i32, i32) {
    %c0_i32 = arith.constant 0 : i32
    %c0_i32_0 = arith.constant 0 : i32
    %c0_i32_1 = arith.constant 0 : i32
    return %arg0, %arg1, %c0_i32, %c0_i32_0 : i32, i32, i32, i32
  }
  func.func @transform_2(%arg0: i32, %arg1: i32) -> (i32, i32, i32, i32) {
    %c1_i32 = arith.constant 1 : i32
    %0 = arith.addi %arg1, %c1_i32 : i32
    %c8_i32 = arith.constant 8 : i32
    %1 = arith.muli %0, %c8_i32 : i32
    %c15_i32 = arith.constant 15 : i32
    %2 = arith.minsi %1, %c15_i32 : i32
    %c0_i32 = arith.constant 0 : i32
    %c0_i32_0 = arith.constant 0 : i32
    %c0_i32_1 = arith.constant 0 : i32
    return %arg0, %2, %c0_i32, %c0_i32_0 : i32, i32, i32, i32
  }
  func.func @transform_3(%arg0: i32, %arg1: i32) -> (i32, i32) {
    %c0_i32 = arith.constant 0 : i32
    %c0_i32_0 = arith.constant 0 : i32
    %c0_i32_1 = arith.constant 0 : i32
    return %c0_i32, %c0_i32_0 : i32, i32
  }
  func.func @transform_4(%arg0: i32, %arg1: i32) -> (i32, i32) {
    %c0_i32 = arith.constant 0 : i32
    %c0_i32_0 = arith.constant 0 : i32
    %c0_i32_1 = arith.constant 0 : i32
    return %c0_i32, %c0_i32_0 : i32, i32
  }
  func.func @transform_5(%arg0: i32, %arg1: i32) -> (i32, i32, i32, i32) {
    %c0_i32 = arith.constant 0 : i32
    %c0_i32_0 = arith.constant 0 : i32
    %c0_i32_1 = arith.constant 0 : i32
    %c0_i32_2 = arith.constant 0 : i32
    %c0_i32_3 = arith.constant 0 : i32
    return %c0_i32, %c0_i32_0, %c0_i32_1, %c0_i32_2 : i32, i32, i32, i32
  }
  func.func @transform_6(%arg0: i32, %arg1: i32) -> (i32, i32) {
    %c0_i32 = arith.constant 0 : i32
    %c0_i32_0 = arith.constant 0 : i32
    %c0_i32_1 = arith.constant 0 : i32
    return %c0_i32, %c0_i32_0 : i32, i32
  }
  func.func @transform_7(%arg0: i32, %arg1: i32) -> (i32, i32) {
    %c0_i32 = arith.constant 0 : i32
    %c0_i32_0 = arith.constant 0 : i32
    %c0_i32_1 = arith.constant 0 : i32
    return %c0_i32, %c0_i32_0 : i32, i32
  }
  func.func @transform_8(%arg0: i32, %arg1: i32) -> (i32, i32) {
    %c0_i32 = arith.constant 0 : i32
    %c0_i32_0 = arith.constant 0 : i32
    %c0_i32_1 = arith.constant 0 : i32
    return %c0_i32, %c0_i32_0 : i32, i32
  }
  func.func @transform_9(%arg0: i32, %arg1: i32) -> (i32, i32, i32, i32) {
    %c0_i32 = arith.constant 0 : i32
    %c0_i32_0 = arith.constant 0 : i32
    %c0_i32_1 = arith.constant 0 : i32
    return %arg0, %arg1, %c0_i32, %c0_i32_0 : i32, i32, i32, i32
  }
}

</mosaic_0001>

<bundles_post_ra>
// kernel: tpu_custom_call.1
= control target key start
LH: loop header
LB: loop body
LE: loop exit
PB: predicated region body
PF: predicated region fallthrough
CT: control target
= control target key end

     0   :  { %s3941_s0 = inlined_call_operand.hbm [shape: f32[2,16,16,16], index: 0, kind: input, shape index: {}]   ;;  %s3942_s1 = inlined_call_operand.hbm [shape: f32[2,16,16,16], index: 1, kind: input, shape index: {}]   ;;  %s3943_s2 = inlined_call_operand.hbm [shape: f32[2,16,16,16], index: 2, kind: input, shape index: {}]   ;;  %s3944_s3 = inlined_call_operand.hbm [shape: bf16[16,16], index: 3, kind: input, shape index: {}]   ;;  %s3945_s4 = inlined_call_operand.vmem [shape: f32[1,16], index: 4, kind: input, shape index: {}]   ;;  %s3946_s5 = inlined_call_operand.hbm [shape: bf16[3,3,16,16], index: 5, kind: input, shape index: {}]   ;;  %s3947_s6 = inlined_call_operand.vmem [shape: f32[1,16], index: 6, kind: input, shape index: {}]   ;;  %s3948_s7 = inlined_call_operand.hbm [shape: bf16[16,16], index: 7, kind: input, shape index: {}]   ;;  %s3949_s8 = inlined_call_operand.vmem [shape: f32[1,16], index: 8, kind: input, shape index: {}]   ;;  %s3950_s9 = inlined_call_operand.hbm [shape: f32[2,16,16,16], index: 9, kind: output, shape index: {}]  }
   0x1   :  { %3976 = sst [smem:[#allocation35_spill]] %s3941_s0 }
   0x2   :  { %3977 = sst [smem:[#allocation36_spill]] %s3942_s1 }
   0x3   :  { %3978 = sst [smem:[#allocation37_spill]] %s3943_s2 }
   0x4   :  { %3979 = sst [smem:[#allocation38_spill]] %s3944_s3 }
   0x5   :  { %3980 = sst [smem:[#allocation39_spill]] %s3945_s4 }
   0x6   :  { %3981 = sst [smem:[#allocation40_spill]] %s3946_s5 }
   0x7   :  { %3982 = sst [smem:[#allocation41_spill]] %s3947_s6 }
   0x8   :  { %3983 = sst [smem:[#allocation42_spill]] %s3948_s7 }
   0x9   :  { %3984 = sst [smem:[#allocation43_spill]] %s3949_s8 }
   0xa   :  { %3985 = sst [smem:[#allocation44_spill]] %s3950_s9 }
   0xb   :  { %14 = vsyncpa [#allocation4], 0 }
   0xc   :  { %16 = vsyncpa [#allocation4 + $0x1], 0 }
   0xd   :  { %17 = vsyncpa [#allocation7], 0 }
   0xe   :  { %19 = vsyncpa [#allocation7 + $0x1], 0 }
   0xf   :  { %20 = vsyncpa [#allocation10], 0 }
  0x10   :  { %21 = vsyncpa [#allocation13], 0 }
  0x11   :  { %22 = vsyncpa [#allocation5], 0 }
  0x12   :  { %24 = vsyncpa [#allocation5 + $0x1], 0  ;;  %s3092_s30 = smov 0   ;;  %s3094_s10 = smov 0  }
  0x13   :  { %s3096_s11 = smov 0   ;;  %s3098_s12 = smov 0  }
  0x14   :  { %s3100_s13 = smov 0   ;;  %s3102_s14 = smov 0  }
  0x15   :  { %s3104_s15 = smov 0   ;;  %s3106_s16 = smov 0  }
  0x16   :  { %s3108_s17 = smov 0   ;;  %s3110_s18 = smov 0  }
  0x17   :  { %s3112_s19 = smov 0   ;;  %s3114_s20 = smov 0  }
  0x18   :  { %s3116_s21 = smov 0   ;;  %s3118_s22 = smov 0  }
  0x19 LB: > { %3986 = sst [smem:[#allocation21_spill]] %s2978_s30  ;;  %s3163_s23 = sadd.s32 4294967295, %s3030_s22   ;;  %s3030_s22 = sphi %s3118_s22, %s30_s22   ;;  %s3026_s21 = sphi %s3116_s21, %s4042_s21   ;;  %s3022_s20 = sphi %s3114_s20, %s4053_s20   ;;  %s3018_s19 = sphi %s3112_s19, %s4040_s19   ;;  %s3014_s18 = sphi %s3110_s18, %s4052_s18   ;;  %s3010_s17 = sphi %s3108_s17, %s4051_s17   ;;  %s3006_s16 = sphi %s3106_s16, %s4050_s16   ;;  %s3002_s15 = sphi %s3104_s15, %s4049_s15   ;;  %s2998_s14 = sphi %s3102_s14, %s4048_s14   ;;  %s2994_s13 = sphi %s3100_s13, %s4047_s13   ;;  %s2990_s12 = sphi %s3098_s12, %s4046_s12   ;;  %s2986_s11 = sphi %s3096_s11, %s4045_s11   ;;  %s2982_s10 = sphi %s3094_s10, %s4044_s10   ;;  %s2978_s30 = sphi %s3092_s30, %s4037_s30  }
  0x1a   : > { %3987 = sst [smem:[#allocation22_spill]] %s2982_s10  ;;  %p2307_p0 = scmp.ge.s32.totalorder %s3030_s22, 1 }
  0x1b   : > { %3988 = sst [smem:[#allocation23_spill]] %s2990_s12  ;;  %p73_p1 = scmp.eq.s32.totalorder %s3163_s23, 0 }
  0x1c   : > { %3989 = sst [smem:[#allocation24_spill]] %s2994_s13  ;;  %p301_p2 = scmp.lt.s32.totalorder %s3030_s22, 5 }
  0x1d   : > { %3990 = sst [smem:[#allocation25_spill]] %s3014_s18  ;;  %s3032_s28 = smov [#allocation9]  }
  0x1e   : > { %3991 = sst [smem:[#allocation26_spill]] %s3018_s19  ;;  %p3171_p3 = pnand %p2307_p0, %p301_p2 }
  0x1f   : > { %3992 = sst [smem:[#allocation27_spill]] %s3026_s21  ;;  %s314_s29 = sshll.u32 %s3032_s28, 4  ;;  %s315_s29 = int_to_ptr.vmem [resolvable:$true] %s314_s29 }
  0x20   : > { %s3993_s3 = sld [smem:[#allocation38_spill]]  ;;  %p2529_p4 = pneg %p3171_p3 }
  0x21   : > { %s3994_s27 = scalar_select %p3171_p3, 1, 0 }
  0x22   : > { %p3179_p5 = pnand %p2529_p4, %p73_p1  ;;  %s3952_s25 = smov 64  }
  0x23   : > { %3995 = sst [smem:[#allocation28_spill]] %s3994_s27  ;;  %s2300_s9 = sadd.s32 4294967294, %s3030_s22  }
  0x24   : > { %s39_s28 = sadd.s32 1, %s3022_s20  ;;  %s42_s19 = sadd.s32 1, %s3026_s21 }
  0x25   : > { %p40_p6 = scmp.ge.s32.totalorder %s39_s28, 2  ;;  %p67_p7 = scmp.eq.s32.totalorder %s3030_s22, 0 }
  0x26   : > { %s312_s26 = sshll.u32 %s3993_s3, 4  ;;  %s3954_s3 = smov 4   ;;  %s313_s26 = int_to_ptr.hbm [resolvable:$true] %s312_s26 }
  0x27   : > { %2532 = dma.hbm_to_vmem [thread:$0]  (!%p3179_p5), %s313_s26, 128, %s315_s29, [#allocation10], %s3952_s25, %s3952_s25, %s3954_s3  }
  0x28   : > { %s87_s8 = sadd.s32 1, %s2998_s14  ;;  %p94_p8 = scmp.ne.s32.totalorder %s2998_s14, %s2994_s13 }
  0x29   : > { %s4055_s28 = smov (%p40_p6, %s39_s28), 0  ;;  %s4057_s19 = smov (!%p40_p6, %s42_s19), %s3026_s21 }
  0x2a   : > { %3997 = sst [smem:[#allocation29_spill]] %s4055_s28  ;;  %s83_s6 = ssub.s32 %s3022_s20, %s4055_s28 }
  0x2b   : > { %p3202_p9 = por %p94_p8, %p67_p7  ;;  %p44_p10 = scmp.ge.s32.totalorder %s4057_s19, 2 }
  0x2c   : > { %p100_p11 = scmp.ne.s32.totalorder %s2994_s13, %s2990_s12  ;;  %p288_p12 = scmp.eq.s32.totalorder %s3163_s23, 3 }
  0x2d   : > { %p294_p13 = scmp.eq.s32.totalorder %s2300_s9, 3  ;;  %s4059_s19 = smov (%p44_p10, %s4057_s19), 0 }
  0x2e   : > { %3999 = sst [smem:[#allocation30_spill]] %s4059_s19  ;;  %p3213_p0 = por %p100_p11, %p73_p1 }
  0x2f   : > { %p3217_p2 = por %p288_p12, %p94_p8  ;;  %s3223_s3 = ssub.s32 %s3026_s21, %s4059_s19 }
  0x30   : > { %s4000_s29 = scalar_select %p3213_p0, 1, 0 }
  0x31   : > { %s4002_s25 = scalar_select %p3217_p2, 1, 0 }
  0x32   : > { %4001 = sst [smem:[#allocation31_spill]] %s4000_s29  ;;  %p3225_p4 = por %p294_p13, %p100_p11 }
  0x33   : > { %4003 = sst [smem:[#allocation32_spill]] %s4002_s25  ;;  %s84_s9 = sor.u32 %s83_s6, %s3223_s3 }
  0x34   : > { %s4004_s12 = scalar_select %p3225_p4, 1, 0 }
  0x35   : > { %p3974_p6 = scmp.lt.s32.totalorder %s3030_s22, 4  ;;  %p85_p10 = scmp.eq.s32.totalorder %s84_s9, 0 }
  0x36   : > { %4005 = sst [smem:[#allocation33_spill]] %s4004_s12  ;;  %s3232_s4 = sshll.u32 %s3026_s21, 5 }
  0x37   : > { %s3235_s18 = scalar_select %p85_p10, %s2998_s14, %s87_s8  }
  0x38   : > { %s393_s29 = sand.u32 1, %s3030_s22   ;;  %s395_s13 = sand.u32 1, %s2998_s14  }
  0x39   : > { %4006 = sst [smem:[#allocation34_spill]] %s3235_s18  ;;  %s2318_s25 = sshll.u32 %s395_s13, 7 }
  0x3a   : > { %s2489_s19 = sshll.u32 %s3022_s20, 4  ;;  %s397_s2 = scalar_lea.vmem [#allocation6], %s2318_s25 }
  0x3b   : > { %s403_s27 = sadd.s32 %s2489_s19, %s3232_s4  ;;  %s408_s0 = sshll.u32 %s397_s2, 4  ;;  %s409_s0 = int_to_ptr.vmem [resolvable:$true] %s408_s0 }
  0x3c   : > { %s2322_s30 = sshll.u32 %s403_s27, 3  ;;  %s4007_s1 = sld [smem:[#allocation36_spill]] }
  0x3d   : > { %p2543_p8 = pnand %p3974_p6, %p3202_p9  ;;  %s4008_s5 = sld [smem:[#allocation40_spill]] }
  0x3e   : > { %s3251_s13 = scalar_lea.sflag [#allocation7], %s393_s29  ;;  %s3970_s2 = smov 128  }
  0x3f   : > { %s3972_s19 = smov 8   ;;  %s4009_s7 = sld [smem:[#allocation42_spill]] }
  0x40   : > { %s4010_s25 = smov 4   ;;  %s4011_s26 = smov 64  }
  0x41   : > { %s2303_s8 = sshll.u32 %s4055_s28, 3  ;;  %p66_p12 = scmp.ne.s32.totalorder %s3010_s17, %s3006_s16 }
  0x42   : > { %s405_s6 = scalar_lea.hbm %s4007_s1, %s2322_s30  ;;  %s3037_s30 = smov [#allocation11]  }
  0x43   : > { %s406_s9 = sshll.u32 %s405_s6, 4  ;;  %s329_s18 = sshll.u32 %s4008_s5, 4  ;;  %s407_s9 = int_to_ptr.hbm [resolvable:$true] %s406_s9  ;;  %s330_s18 = int_to_ptr.hbm [resolvable:$true] %s329_s18 }
  0x44   : > { %2545 = dma.hbm_to_vmem [thread:$0]  (!%p2543_p8), %s407_s9, 2048, %s409_s0, %s3251_s13, %s3970_s2, %s3970_s2, %s3972_s19  }
  0x45   : > { %s331_s10 = sshll.u32 %s3037_s30, 4  ;;  %s346_s27 = sshll.u32 %s4009_s7, 4  ;;  %s332_s10 = int_to_ptr.vmem [resolvable:$true] %s331_s10  ;;  %s347_s27 = int_to_ptr.hbm [resolvable:$true] %s346_s27 }
  0x46   : > { %2535 = dma.hbm_to_vmem [thread:$0]  (!%p3179_p5), %s330_s18, 1152, %s332_s10, [#allocation10], %s4011_s26, %s4011_s26, %s4010_s25  }
  0x47   : > { %s3038_s0 = smov [#allocation12]   ;;  %s2301_s6 = sshll.u32 %s3022_s20, 3 }
  0x48   : > { %s348_s29 = sshll.u32 %s3038_s0, 4  ;;  %s2302_s9 = sadd.s32 4294967295, %s2301_s6  ;;  %s349_s29 = int_to_ptr.vmem [resolvable:$true] %s348_s29 }
  0x49   : > { %2538 = dma.hbm_to_vmem [thread:$0]  (!%p3179_p5), %s347_s27, 128, %s349_s29, [#allocation13], %s4011_s26, %s4011_s26, %s4010_s25  }
  0x4a   : > { %p48_p9 = scmp.gt.s32.totalorder %s2302_s9, 0  ;;  %s2304_s30 = sadd.s32 4294967295, %s2303_s8 }
  0x4b   : > { %p52_p11 = scmp.gt.s32.totalorder %s2304_s30, 0  ;;  %s59_s18 = sadd.s32 1, %s3010_s17 }
  0x4c   : > { %s4061_s9 = smov (!%p48_p9, %s2302_s9), 0  ;;  %p72_p13 = scmp.ne.s32.totalorder %s3006_s16, %s3002_s15 }
  0x4d   : > { %s4063_s30 = smov (!%p52_p11, %s2304_s30), 0  ;;  %s2486_s10 = sadd.s32 8, %s2301_s6 }
  0x4e   : > { %s55_s24 = ssub.s32 %s4061_s9, %s4063_s30  ;;  %p3280_p5 = por %p67_p7, %p66_p12 }
  0x4f   : > { %s56_s12 = sor.u32 %s55_s24, %s3223_s3  ;;  %p3286_p8 = por %p73_p1, %p72_p13 }
  0x50   : > { %p57_p10 = scmp.eq.s32.totalorder %s56_s12, 0  ;;  %p112_p9 = scmp.lt.s32.totalorder %s2486_s10, 15 }
  0x51   : > { %s2488_s25 = sadd.s32 8, %s2303_s8  ;;  %s365_s15 = sand.u32 1, %s3010_s17  }
  0x52   : > { %s3291_s26 = scalar_select %p57_p10, %s3010_s17, %s59_s18  }
  0x53   : > { %p116_p11 = scmp.lt.s32.totalorder %s2488_s25, 15  ;;  %s2312_s0 = sshll.u32 %s365_s15, 4 }
  0x54   : > { %s4014_s29 = sld [smem:[#allocation22_spill]]  ;;  %s2315_s6 = sshll.u32 %s4061_s9, 1 }
  0x55   : > { %s4015_s30 = sld [smem:[#allocation21_spill]]  ;;  %s378_s24 = sadd.s32 %s3232_s4, %s2315_s6 }
  0x56   : > { %s369_s12 = scalar_lea.vmem [#allocation3], %s2312_s0  ;;  %s2317_s19 = sshll.u32 %s378_s24, 3 }
  0x57   : > { %s383_s2 = sshll.u32 %s369_s12, 4  ;;  %s4016_s1 = sld [smem:[#allocation35_spill]]  ;;  %s384_s2 = int_to_ptr.vmem [resolvable:$true] %s383_s2 }
  0x58   : > { %p2540_p12 = pnand %p3974_p6, %p3280_p5  ;;  %s366_s9 = scalar_lea.sflag [#allocation4], %s365_s15 }
  0x59   : > { %s4017_s6 = smov 8   ;;  %s4018_s0 = smov 128  }
  0x5a   : > { %s123_s24 = sadd.s32 1, %s2986_s11  ;;  %s4065_s10 = smov (!%p112_p9, %s2486_s10), 15 }
  0x5b   : > { %s4067_s25 = smov (!%p116_p11, %s2488_s25), 15  ;;  %p130_p13 = scmp.ne.s32.totalorder %s2986_s11, %s4014_s29 }
  0x5c   : > { %p136_p10 = scmp.ne.s32.totalorder %s4014_s29, %s4015_s30  ;;  %s2325_s15 = sshll.u32 %s4065_s10, 1 }
  0x5d   : > { %s380_s5 = scalar_lea.hbm %s4016_s1, %s2317_s19  ;;  %s119_s1 = ssub.s32 %s4065_s10, %s4067_s25 }
  0x5e   : > { %s381_s7 = sshll.u32 %s380_s5, 4  ;;  %s420_s19 = sand.u32 1, %s2986_s11   ;;  %s382_s7 = int_to_ptr.hbm [resolvable:$true] %s381_s7 }
  0x5f   : > { %2542 = dma.hbm_to_vmem [thread:$0]  (!%p2540_p12), %s382_s7, 256, %s384_s2, %s366_s9, %s4018_s0, %s4018_s0, %s4017_s6  }
  0x60   : > { %s120_s21 = sor.u32 %s119_s1, %s3223_s3  ;;  %p3316_p5 = por %p130_p13, %p67_p7 }
  0x61   : > { %p121_p6 = scmp.eq.s32.totalorder %s120_s21, 0  ;;  %p3322_p12 = por %p136_p10, %p73_p1 }
  0x62   : > { %s2323_s2 = sshll.u32 %s420_s19, 4  ;;  %s431_s25 = sadd.s32 %s2325_s15, %s3232_s4 }
  0x63   : > { %s3327_s29 = scalar_select %p121_p6, %s2986_s11, %s123_s24  }
  0x64   : > { %s2327_s30 = sshll.u32 %s431_s25, 3  ;;  %s422_s3 = scalar_lea.vmem [#allocation8], %s2323_s2 }
  0x65   : > { %s436_s12 = sshll.u32 %s422_s3, 4  ;;  %s4021_s9 = sld [smem:[#allocation37_spill]]  ;;  %s437_s12 = int_to_ptr.vmem [resolvable:$true] %s436_s12 }
  0x66   : > { %p4022_p7 = scmp.lt.s32.totalorder %s3030_s22, 4  ;;  %s450_s4 = sand.u32 (!%p3171_p3), 1, %s3006_s16  }
  0x67   : > { %s2329_s24 = sshll.u32 (!%p3171_p3), %s450_s4, 4  ;;  %s451_s19 = scalar_lea.sflag (!%p3171_p3), [#allocation4], %s450_s4 }
  0x68   : > { %p2546_p9 = pnand %p4022_p7, %p3316_p5  ;;  %s454_s21 = scalar_lea.vmem (!%p3171_p3), [#allocation3], %s2329_s24 }
  0x69   : > { %448 = sbr.rel (%p3171_p3) target bundleno = 942 (0x3ae), region = 56 }
  0x6b   : > { %s433_s1 = scalar_lea.hbm %s4021_s9, %s2327_s30 }
  0x6c   : > { %s434_s28 = sshll.u32 %s433_s1, 4  ;;  %s435_s28 = int_to_ptr.hbm [resolvable:$true] %s434_s28 }
  0x6d   : > { %2548 = dma.hbm_to_vmem [thread:$0]  (!%p2546_p9), %s435_s28, 256, %s437_s12, %s3251_s13, %s4018_s0, %s4018_s0, %s4017_s6  }
  0x6e   : > { %2953 = dma.done.wait (%p3286_p8), %s451_s19, 256  }
  0x6f   : > { %2955 = vsyncadd (%p3286_p8), %s451_s19, 4294967040  ;;  %s4024_s5 = sld [smem:[#allocation24_spill]]  ;;  %s460_s15 = sand.u32 1, %s3163_s23  }
  0x70   : > { %s461_s6 = scalar_lea.sflag [#allocation7], %s460_s15 }
  0x75   : > { %s462_s28 = sand.u32 1, %s4024_s5  }
  0x76   : > { %s3352_s13 = sshll.u32 %s462_s28, 7 }
  0x77   : > { %s3355_s0 = scalar_lea.vmem [#allocation6], %s3352_s13 }
  0x78   : > { %2957 = dma.done.wait (%p3213_p0), %s461_s6, 2048  }
  0x79   : > { %2959 = vsyncadd (%p3213_p0), %s461_s6, 4294965248  ;;  %s4026_s27 = sld [smem:[#allocation22_spill]] }
  0x7f   : > { %s472_s25 = sand.u32 1, %s4026_s27  }
  0x80   : > { %s3362_s30 = sshll.u32 %s472_s25, 4 }
  0x81   : > { %s474_s3 = scalar_lea.vmem [#allocation8], %s3362_s30 }
  0x82   : > { %2961 = dma.done.wait (%p3322_p12), %s461_s6, 256  }
  0x83   : > { %2963 = vsyncadd (%p3322_p12), %s461_s6, 4294967040 }
  0x84   : > { %2965 = dma.done.wait (%p73_p1), [#allocation10], 1280  }
  0x85   : > { %2967 = vsyncadd (%p73_p1), [#allocation10], 4294966016 }
  0x86   : > { %2969 = dma.done.wait (%p73_p1), [#allocation13], 128  }
  0x87   : > { %2971 = vsyncadd (%p73_p1), [#allocation13], 4294967168  ;;  %v2492_v0 = vld [vmem:[#allocation9] sm:$0xff]  ;;  %v572_v3 = vld [vmem:[%s454_s21 + $0x8] sm:$0xff]  ;;  %vm592_vm0 = vcmask 130048   ;;  %vm546_vm1 = vcmask 122880  }
  0x88   : > { %v2493_v1 = vld [vmem:[#allocation9] sm:$0xff]  ;;  %v618_v6 = vld [vmem:[%s3355_s0 + $0x8] sm:$0xff]  ;;  %603 = vmatpush.bf16.msra.mxu2 %v2492_v0  ;;  %v574_v7 = vpack.c.bf16 %v572_v3, %v572_v3  ;;  %v619_v16 = vld [vmem:[%s3355_s0 + $0x10] sm:$0xff]  ;;  %s4027_s23 = sld [smem:[#allocation25_spill]]  ;;  %s3807_s25 = scalar_lea.vmem [#allocation14], %s3352_s13 }
  0x89   : > { %v571_v2 = vld [vmem:[%s454_s21] sm:$0xff]  ;;  %732 = vmatpush.bf16.msra.mxu1 %v2493_v1  ;;  %v634_v9 = vpack.c.bf16 %v618_v6, %v618_v6  ;;  %v620_v17 = vld [vmem:[%s3355_s0 + $0x18] sm:$0xff]  ;;  %v635_v18 = vpack.c.bf16 %v619_v16, %v619_v16  ;;  %v622_v24 = vld [vmem:[%s3355_s0 + $0x28] sm:$0xff]  ;;  %s4028_s8 = sld [smem:[#allocation39_spill]]  ;;  %s2128_s4 = sshll.u32 %s3807_s25, 4  ;;  %s2129_s4 = int_to_ptr.vmem [resolvable:$true] %s2128_s4 }
  0x8a   : > { %v573_v4 = vpack.c.bf16 %v571_v2, %v571_v2  ;;  %v617_v5 = vld [vmem:[%s3355_s0] sm:$0xff]  ;;  %v584_v11 = vunpack.c.l.b16 %v574_v7  ;;  %v636_v19 = vpack.c.bf16 %v620_v17, %v620_v17  ;;  %v638_v26 = vpack.c.bf16 %v622_v24, %v622_v24  ;;  %v623_v30 = vld [vmem:[%s3355_s0 + $0x30] sm:$0xff]  ;;  %v624_v31 = vld [vmem:[%s3355_s0 + $0x38] sm:$0xff]  ;;  %s4029_s2 = sld [smem:[#allocation41_spill]]  ;;  %s2113_s19 = scalar_lea.sflag [#allocation5], %s462_s28 }
  0x8b   : > { %v633_v8 = vpack.c.bf16 %v617_v5, %v617_v5  ;;  %v672_v13 = vunpack.c.l.b16 %v634_v9  ;;  %v673_v20 = vunpack.c.l.b16 %v635_v18  ;;  %v621_v23 = vld [vmem:[%s3355_s0 + $0x20] sm:$0xff]  ;;  %v639_v32 = vpack.c.bf16 %v623_v30, %v623_v30  ;;  %v626_v38 = vld [vmem:[%s3355_s0 + $0x48] sm:$0xff]  ;;  %v631_v44 = vld [vmem:[%s3355_s0 + $0x70] sm:$0xff]  ;;  %s4030_s27 = sld [smem:[#allocation43_spill]] }
  0x8c   : > { %v583_v10 = vunpack.c.l.b16 %v573_v4  ;;  %2506 = vmatpush.bf16.msrb.mxu2 %v2493_v1  ;;  %v674_v21 = vunpack.c.l.b16 %v636_v19  ;;  %v637_v25 = vpack.c.bf16 %v621_v23, %v621_v23  ;;  %v676_v28 = vunpack.c.l.b16 %v638_v26  ;;  %v625_v37 = vld [vmem:[%s3355_s0 + $0x40] sm:$0xff]  ;;  %v632_v45 = vld [vmem:[%s3355_s0 + $0x78] sm:$0xff]  ;;  %v627_v46 = vld [vmem:[%s3355_s0 + $0x50] sm:$0xff]  ;;  %s4031_s13 = sld [smem:[#allocation26_spill]] }
  0x8d   : > { %v671_v12 = vunpack.c.l.b16 %v633_v8  ;;  %v640_v33 = vpack.c.bf16 %v624_v31, %v624_v31  ;;  %v677_v34 = vunpack.c.l.b16 %v639_v32  ;;  %v641_v39 = vpack.c.bf16 %v625_v37, %v625_v37  ;;  %v628_v47 = vld [vmem:[%s3355_s0 + $0x58] sm:$0xff]  ;;  %v629_v58 = vld [vmem:[%s3355_s0 + $0x60] sm:$0xff]  ;;  %v630_v59 = vld [vmem:[%s3355_s0 + $0x68] sm:$0xff] }
  0x8e   : > { %v585_v14 = vpack.c.b16 %v584_v11, %v583_v10  ;;  %v688_v22 = vpack.c.b16 %v674_v21, %v673_v20  ;;  %v675_v27 = vunpack.c.l.b16 %v637_v25  ;;  %v642_v40 = vpack.c.bf16 %v626_v38, %v626_v38  ;;  %v2496_v2 = vld [vmem:[#allocation11 + $0x8] sm:$0xff]  ;;  %v2498_v3 = vld [vmem:[#allocation11 + $0x18] sm:$0xff]  ;;  %v2495_v4 = vld [vmem:[#allocation11] sm:$0xff]  ;;  %p567_p1 = scmp.gt.s32.totalorder %s4027_s23, 0  ;;  %p569_p3 = scmp.lt.s32.totalorder %s4027_s23, 1 }
  0x8f   : > { %v687_v15 = vpack.c.b16 %v672_v13, %v671_v12  ;;  %v678_v35 = vunpack.c.l.b16 %v640_v33  ;;  %v679_v41 = vunpack.c.l.b16 %v641_v39  ;;  %v647_v48 = vpack.c.bf16 %v631_v44, %v631_v44  ;;  %2507 = vmatpush.bf16.msra.mxu3 %v2496_v2  ;;  %1250 = vmatpush.bf16.msrb.mxu1 %v2498_v3  ;;  %v3425_v5 = vld [vmem:[%s4028_s8] ss:$0 sm:$0xff]  ;;  %v2499_v6 = vld [vmem:[#allocation11 + $0x20] sm:$0xff]  ;;  %v2494_v23 = vld [vmem:[#allocation9] sm:$0xff]  ;;  %s2505_s30 = sshll.u32 %s4027_s23, 4 }
  0x90   : > { %2340 = vmatmul.msk.bf16.vlgmr.msra.gmra.mxu2 %vm592_vm0, %v585_v14  ;;  %v689_v29 = vpack.c.b16 %v676_v28, %v675_v27  ;;  %v680_v42 = vunpack.c.l.b16 %v642_v40  ;;  %v648_v49 = vpack.c.bf16 %v632_v45, %v632_v45  ;;  %v643_v52 = vpack.c.bf16 %v627_v46, %v627_v46  ;;  %1022 = vmatpush.bf16.msra.mxu0 %v2495_v4  ;;  %v2684_v10 = vld [vmem:[%s4028_s8] ss:$0 sm:$0xff]  ;;  %s568_s1 = scalar_select %p567_p1, 1.0, 0.0  ;;  %v808_v20 = vld [vmem:[%s474_s3 + $0x8] sm:$0xff] }
  0x91   : > { %2345 = vmatmul.msk.bf16.vlgmr.msra.gmra.mxu1 %vm592_vm0, %v687_v15  ;;  %v690_v36 = vpack.c.b16 %v678_v35, %v677_v34  ;;  %v685_v50 = vunpack.c.l.b16 %v647_v48  ;;  %v644_v53 = vpack.c.bf16 %v628_v47, %v628_v47  ;;  %v645_v60 = vpack.c.bf16 %v629_v58, %v629_v58  ;;  %v807_v19 = vld [vmem:[%s474_s3] sm:$0xff]  ;;  %838 = vmatpush.bf16.msra.mxu2 %v2494_v23  ;;  %s570_s10 = scalar_select %p569_p3, 1.0, 0.0 }
  0x92   : > { %v691_v43 = vpack.c.b16 %v680_v42, %v679_v41  ;;  %v686_v51 = vunpack.c.l.b16 %v648_v49  ;;  %v681_v55 = vunpack.c.l.b16 %v643_v52  ;;  %v646_v61 = vpack.c.bf16 %v630_v59, %v630_v59  ;;  %s2481_s3 = sshll.u32 %s4031_s13, 5 }
  0x93   : > { %v682_v56 = vunpack.c.l.b16 %v644_v53  ;;  %v683_v62 = vunpack.c.l.b16 %v645_v60  ;;  %v3039_v1 = vmov 0.0   ;;  %1372 = vmatpush.bf16.msrb.mxu3 %v2499_v6  ;;  %v612_v13 = vstv %s568_s1  ;;  %s2125_s7 = sadd.s32 %s2505_s30, %s2481_s3  ;;  %s4032_s1 = sld [smem:[#allocation44_spill]] }
  0x94   : > { %v694_v54 = vpack.c.b16 %v686_v51, %v685_v50  ;;  %v684_v63 = vunpack.c.l.b16 %v646_v61  ;;  %548 = vst.msk [vmem:[#allocation2 + $0x18] sm:$0x1] %vm546_vm1, %v3039_v1  ;;  %v809_v21 = vpack.c.bf16 %v807_v19, %v807_v19  ;;  %s2482_s12 = sshll.u32 %s2125_s7, 3 }
  0x95   : > { %v692_v57 = vpack.c.b16 %v682_v56, %v681_v55  ;;  %547 = vst.msk [vmem:[#allocation2] sm:$0x1] %vm546_vm1, %v3039_v1 }
  0x96   : > { %v693_v0 = vpack.c.b16 %v684_v63, %v683_v62  ;;  %549 = vst.msk [vmem:[#allocation2 + $0x30] sm:$0x1] %vm546_vm1, %v3039_v1  ;;  %v819_v25 = vunpack.c.l.b16 %v809_v21 }
  0x97   : > { %550 = vst.msk [vmem:[#allocation2 + $0x48] sm:$0x1] %vm546_vm1, %v3039_v1 }
  0x98   : > { %551 = vst.msk [vmem:[#allocation2 + $0x60] sm:$0x1] %vm546_vm1, %v3039_v1 }
  0x99   : > { %552 = vst.msk [vmem:[#allocation2 + $0x78] sm:$0x1] %vm546_vm1, %v3039_v1  ;;  %s2888_s6 = scalar_lea.hbm %s4032_s1, 512 }
  0x9a   : > { %553 = vst.msk [vmem:[#allocation2 + $0x90] sm:$0x1] %vm546_vm1, %v3039_v1 }
  0x9b   : > { %554 = vst.msk [vmem:[#allocation2 + $0xa8] sm:$0x1] %vm546_vm1, %v3039_v1 }
  0x9c   : > { %555 = vst.msk [vmem:[#allocation2 + $0xc0] sm:$0x1] %vm546_vm1, %v3039_v1 }
  0x9d   : > { %556 = vst.msk [vmem:[#allocation2 + $0xd8] sm:$0x1] %vm546_vm1, %v3039_v1 }
  0x9e   : > { %557 = vst.msk [vmem:[#allocation2 + $0x11] sm:$0x1] %vm546_vm1, %v3039_v1 }
  0x9f   : > { %558 = vst.msk [vmem:[#allocation2 + $0x29] sm:$0x1] %vm546_vm1, %v3039_v1 }
  0xa0   : > { %2352 = vmatmul.msk.bf16.vlgmr.msrb.gmra.mxu2 %vm592_vm0, %v694_v54  ;;  %559 = vst.msk [vmem:[#allocation2 + $0x41] sm:$0x1] %vm546_vm1, %v3039_v1 }
  0xa1   : > { %2346 = vmatmul.msk.bf16.gmra.mxu1 %vm592_vm0, %v688_v22  ;;  %560 = vst.msk [vmem:[#allocation2 + $0x59] sm:$0x1] %vm546_vm1, %v3039_v1  ;;  %v810_v22 = vpack.c.bf16 %v808_v20, %v808_v20  ;;  %943 = vmatpush.bf16.msrb.mxu2 %v2496_v2  ;;  %v2497_v20 = vld [vmem:[#allocation11 + $0x10] sm:$0xff] }
  0xa2   : > { %561 = vst.msk [vmem:[#allocation2 + $0x71] sm:$0x1] %vm546_vm1, %v3039_v1 }
  0xa3   : > { %562 = vst.msk [vmem:[#allocation2 + $0x89] sm:$0x1] %vm546_vm1, %v3039_v1  ;;  %v820_v26 = vunpack.c.l.b16 %v810_v22 }
  0xa4   : > { %563 = vst.msk [vmem:[#allocation2 + $0xa1] sm:$0x1] %vm546_vm1, %v3039_v1 }
  0xa5   : > { %564 = vst.msk [vmem:[#allocation2 + $0xb9] sm:$0x1] %vm546_vm1, %v3039_v1 }
  0xa6   : > { %565 = vst.msk [vmem:[#allocation2 + $0xd1] sm:$0x1] %vm546_vm1, %v3039_v1 }
  0xa7   : > { %566 = vst.msk [vmem:[#allocation2 + $0xe9] sm:$0x1] %vm546_vm1, %v3039_v1 }
  0xb1   : > { %2347 = vmatmul.msk.bf16.gmra.mxu1 %vm592_vm0, %v689_v29  ;;  %v821_v29 = vpack.c.b16 %v820_v26, %v819_v25 }
  0xb3   : > { %2357 = vmatmul.msk.bf16.vlgmr.msra.gmra.mxu2 %vm592_vm0, %v821_v29 }
  0xb4   : > { %2508 = vmatpush.bf16.msra.mxu2 %v2495_v4 }
  0xc1   : > { %2348 = vmatmul.msk.bf16.gmra.mxu1 %vm592_vm0, %v690_v36 }
  0xd1   : > { %2349 = vmatmul.msk.bf16.gmra.mxu1 %vm592_vm0, %v691_v43 }
  0xe1   : > { %2350 = vmatmul.msk.bf16.gmra.mxu1 %vm592_vm0, %v692_v57 }
  0xf1   : > { %2351 = vmatmul.msk.bf16.gmra.mxu1 %vm592_vm0, %v693_v0 }
 0x10e   : > { %v734_v7 = vpop.f32.mrf.mxu1 }
 0x10f   : > { %v735_v8 = vadd.f32 %v3425_v5, %v734_v7 }
 0x111   : > { %v774_v9 = vmax.f32 %v735_v8, 0.0 }
 0x113   : > { %791 = vst.msk [vmem:[#allocation2 + $0x19] sm:$0xff] %vm592_vm0, %v774_v9  ;;  %v605_v11 = vpop.f32.mrf.mxu2 }
 0x114   : > { %v606_v12 = vadd.f32 %v2684_v10, %v605_v11 }
 0x116   : > { %v736_v14 = vpop.f32.mrf.mxu1  ;;  %v610_v15 = vmax.f32 %v606_v12, 0.0 }
 0x117   : > { %v737_v16 = vadd.f32 %v3425_v5, %v736_v14 }
 0x118   : > { %v613_v17 = vmul.f32 %v612_v13, %v610_v15 }
 0x119   : > { %v775_v18 = vmax.f32 %v737_v16, 0.0 }
 0x11a   : > { %615 = vst.msk [vmem:[#allocation2 + $0x1] sm:$0xff] %vm592_vm0, %v613_v17  ;;  %v881_v34 = vld [vmem:[#allocation2 + $0x19] sm:$0xff] }
 0x11b   : > { %792 = vst.msk [vmem:[#allocation2 + $0x21] sm:$0xff] %vm592_vm0, %v775_v18  ;;  %v607_v24 = vpop.f32.mrf.mxu2  ;;  %v1186_v36 = vld [vmem:[#allocation2 + $0x18] sm:$0xff] }
 0x11c   : > { %v608_v27 = vadd.f32 %v2684_v10, %v607_v24 }
 0x11e   : > { %v739_v28 = vpop.f32.mrf.mxu1  ;;  %v611_v30 = vmax.f32 %v608_v27, 0.0 }
 0x11f   : > { %v740_v31 = vadd.f32 %v3425_v5, %v739_v28 }
 0x120   : > { %v614_v32 = vmul.f32 %v612_v13, %v611_v30 }
 0x121   : > { %v776_v33 = vmax.f32 %v740_v31, 0.0  ;;  %v853_v42 = vld [vmem:[#allocation2] sm:$0xff] }
 0x122   : > { %616 = vst.msk [vmem:[#allocation2 + $0x9] sm:$0xff] %vm592_vm0, %v614_v32  ;;  %v882_v35 = vld [vmem:[#allocation2 + $0x21] sm:$0xff] }
 0x123   : > { %v1187_v37 = vld [vmem:[#allocation2 + $0x20] sm:$0xff]  ;;  %793 = vst.msk [vmem:[#allocation2 + $0x31] sm:$0xff] %vm592_vm0, %v776_v33  ;;  %v3444_v38 = vpack.c.bf16 %v882_v35, %v881_v34  ;;  %v769_v23 = vpop.f32.mrf.mxu2 }
 0x124   : > { %v1202_v39 = vpack.c.bf16 %v1187_v37, %v1186_v36  ;;  %v879_v46 = vld [vmem:[#allocation2 + $0x1] sm:$0xff]  ;;  %v770_v25 = vadd.f32 %v3425_v5, %v769_v23 }
 0x125   : > { %2363 = vmatmul.msk.bf16.vlgmr.msra.gmra.mxu3 %vm592_vm0, %v3444_v38  ;;  %v2500_v37 = vld [vmem:[#allocation11 + $0x28] sm:$0xff] }
 0x126   : > { %2398 = vmatmul.msk.bf16.vlgmr.msrb.gmra.mxu1 %vm592_vm0, %v1202_v39  ;;  %v741_v40 = vpop.f32.mrf.mxu1  ;;  %v788_v27 = vmax.f32 %v770_v25, 0.0  ;;  %1494 = vmatpush.bf16.msrb.mxu0 %v2500_v37 }
 0x127   : > { %v742_v41 = vadd.f32 %v3425_v5, %v741_v40 }
 0x128   : > { %805 = vst.msk [vmem:[#allocation2 + $0xc1] sm:$0xff] %vm592_vm0, %v788_v27 }
 0x129   : > { %v777_v43 = vmax.f32 %v742_v41, 0.0  ;;  %v854_v44 = vld [vmem:[#allocation2 + $0x8] sm:$0xff] }
 0x12a   : > { %v869_v45 = vpack.c.bf16 %v854_v44, %v853_v42  ;;  %v880_v47 = vld [vmem:[#allocation2 + $0x9] sm:$0xff]  ;;  %v883_v52 = vld [vmem:[#allocation2 + $0x31] sm:$0xff] }
 0x12b   : > { %794 = vst.msk [vmem:[#allocation2 + $0x39] sm:$0xff] %vm592_vm0, %v777_v43  ;;  %v895_v49 = vpack.c.bf16 %v880_v47, %v879_v46  ;;  %v1188_v54 = vld [vmem:[#allocation2 + $0x30] sm:$0xff]  ;;  %v771_v36 = vpop.f32.mrf.mxu2 }
 0x12c   : > { %2374 = vmatmul.msk.bf16.vlgmr.msra.gmra.mxu0 %vm592_vm0, %v869_v45  ;;  %v772_v40 = vadd.f32 %v3425_v5, %v771_v36 }
 0x12d   : > { %2362 = vmatmul.msk.bf16.vlgmr.msrb.gmra.mxu2 %vm592_vm0, %v895_v49 }
 0x12e   : > { %v744_v48 = vpop.f32.mrf.mxu1  ;;  %1128 = vmatpush.bf16.msrb.mxu2 %v2497_v20  ;;  %v789_v42 = vmax.f32 %v772_v40, 0.0 }
 0x12f   : > { %v745_v50 = vadd.f32 %v3425_v5, %v744_v48 }
 0x130   : > { %806 = vst.msk [vmem:[#allocation2 + $0xc9] sm:$0xff] %vm592_vm0, %v789_v42 }
 0x131   : > { %v778_v51 = vmax.f32 %v745_v50, 0.0 }
 0x132   : > { %v884_v53 = vld [vmem:[#allocation2 + $0x39] sm:$0xff] }
 0x133   : > { %v1189_v55 = vld [vmem:[#allocation2 + $0x38] sm:$0xff]  ;;  %795 = vst.msk [vmem:[#allocation2 + $0x49] sm:$0xff] %vm592_vm0, %v778_v51  ;;  %v3455_v56 = vpack.c.bf16 %v884_v53, %v883_v52  ;;  %v2501_v53 = vld [vmem:[#allocation11 + $0x30] sm:$0xff] }
 0x134   : > { %v3457_v57 = vpack.c.bf16 %v1189_v55, %v1188_v54  ;;  %v2503_v54 = vld [vmem:[#allocation11 + $0x40] sm:$0xff] }
 0x135   : > { %2364 = vmatmul.msk.bf16.gmra.mxu3 %vm592_vm0, %v3455_v56 }
 0x136   : > { %2399 = vmatmul.msk.bf16.gmra.mxu1 %vm592_vm0, %v3457_v57  ;;  %v746_v58 = vpop.f32.mrf.mxu1  ;;  %1861 = vmatpush.bf16.msra.mxu3 %v2503_v54 }
 0x137   : > { %v747_v59 = vadd.f32 %v3425_v5, %v746_v58 }
 0x139   : > { %v779_v60 = vmax.f32 %v747_v59, 0.0  ;;  %v2502_v59 = vld [vmem:[#allocation11 + $0x38] sm:$0xff] }
 0x13a   : > { %v885_v0 = vld [vmem:[#allocation2 + $0x49] sm:$0xff]  ;;  %1739 = vmatpush.bf16.msra.mxu1 %v2502_v59 }
 0x13b   : > { %796 = vst.msk [vmem:[#allocation2 + $0x51] sm:$0xff] %vm592_vm0, %v779_v60  ;;  %v1190_v2 = vld [vmem:[#allocation2 + $0x48] sm:$0xff] }
 0x13c   : > { %2375 = vmatmul.msk.bf16.gmra.mxu0 %vm592_vm0, %v1202_v39 }
 0x13e   : > { %v749_v61 = vpop.f32.mrf.mxu1 }
 0x13f   : > { %v750_v62 = vadd.f32 %v3425_v5, %v749_v61 }
 0x141   : > { %v780_v63 = vmax.f32 %v750_v62, 0.0 }
 0x142   : > { %v886_v1 = vld [vmem:[#allocation2 + $0x51] sm:$0xff] }
 0x143   : > { %v1191_v3 = vld [vmem:[#allocation2 + $0x50] sm:$0xff]  ;;  %797 = vst.msk [vmem:[#allocation2 + $0x61] sm:$0xff] %vm592_vm0, %v780_v63  ;;  %v3468_v4 = vpack.c.bf16 %v886_v1, %v885_v0 }
 0x144   : > { %v3470_v6 = vpack.c.bf16 %v1191_v3, %v1190_v2  ;;  %v1431_v2 = vld [vmem:[#allocation2 + $0x22] sm:$0xff]  ;;  %v1435_v23 = vld [vmem:[#allocation2 + $0x52] sm:$0xff] }
 0x145   : > { %2365 = vmatmul.msk.bf16.gmra.mxu3 %vm592_vm0, %v3468_v4 }
 0x146   : > { %2400 = vmatmul.msk.bf16.gmra.mxu1 %vm592_vm0, %v3470_v6  ;;  %v751_v7 = vpop.f32.mrf.mxu1 }
 0x147   : > { %v752_v8 = vadd.f32 %v3425_v5, %v751_v7  ;;  %v1200_v7 = vld [vmem:[#allocation2 + $0xc0] sm:$0xff] }
 0x149   : > { %v781_v9 = vmax.f32 %v752_v8, 0.0  ;;  %v1201_v8 = vld [vmem:[#allocation2 + $0xc8] sm:$0xff] }
 0x14a   : > { %v887_v13 = vld [vmem:[#allocation2 + $0x61] sm:$0xff] }
 0x14b   : > { %798 = vst.msk [vmem:[#allocation2 + $0x69] sm:$0xff] %vm592_vm0, %v781_v9  ;;  %v1192_v15 = vld [vmem:[#allocation2 + $0x60] sm:$0xff] }
 0x14c   : > { %2376 = vmatmul.msk.bf16.gmra.mxu0 %vm592_vm0, %v3457_v57  ;;  %v1064_v9 = vld [vmem:[#allocation2 + $0x2] sm:$0xff] }
 0x14e   : > { %v754_v10 = vpop.f32.mrf.mxu1 }
 0x14f   : > { %v755_v11 = vadd.f32 %v3425_v5, %v754_v10  ;;  %v1065_v10 = vld [vmem:[#allocation2 + $0xa] sm:$0xff] }
 0x151   : > { %v782_v12 = vmax.f32 %v755_v11, 0.0  ;;  %v3539_v11 = vpack.c.bf16 %v1201_v8, %v1200_v7 }
 0x152   : > { %v888_v14 = vld [vmem:[#allocation2 + $0x69] sm:$0xff] }
 0x153   : > { %v1193_v16 = vld [vmem:[#allocation2 + $0x68] sm:$0xff]  ;;  %799 = vst.msk [vmem:[#allocation2 + $0x79] sm:$0xff] %vm592_vm0, %v782_v12  ;;  %v3482_v17 = vpack.c.bf16 %v888_v14, %v887_v13  ;;  %v1080_v12 = vpack.c.bf16 %v1065_v10, %v1064_v9  ;;  %v1432_v13 = vld [vmem:[#allocation2 + $0x32] sm:$0xff]  ;;  %v1433_v14 = vld [vmem:[#allocation2 + $0x3a] sm:$0xff] }
 0x154   : > { %v3484_v18 = vpack.c.bf16 %v1193_v16, %v1192_v15  ;;  %v3546_v15 = vpack.c.bf16 %v1433_v14, %v1432_v13  ;;  %v2685_v16 = vld [vmem:[%s4028_s8] ss:$0 sm:$0xff]  ;;  %v1436_v37 = vld [vmem:[#allocation2 + $0x62] sm:$0xff] }
 0x155   : > { %2366 = vmatmul.msk.bf16.gmra.mxu3 %vm592_vm0, %v3482_v17 }
 0x156   : > { %2401 = vmatmul.msk.bf16.gmra.mxu1 %vm592_vm0, %v3484_v18  ;;  %v756_v19 = vpop.f32.mrf.mxu1 }
 0x157   : > { %v757_v21 = vadd.f32 %v3425_v5, %v756_v19  ;;  %v840_v19 = vpop.f32.mrf.mxu2 }
 0x158   : > { %v841_v20 = vadd.f32 %v2685_v16, %v840_v19 }
 0x159   : > { %v783_v22 = vmax.f32 %v757_v21, 0.0  ;;  %v847_v21 = vstv %s570_s10  ;;  %s2127_s10 = scalar_lea.hbm %s4032_s1, %s2482_s12 }
 0x15a   : > { %v889_v29 = vld [vmem:[#allocation2 + $0x79] sm:$0xff]  ;;  %s2130_s24 = sshll.u32 %s2127_s10, 4  ;;  %s2131_s24 = int_to_ptr.hbm [resolvable:$true] %s2130_s24 }
 0x15b   : > { %800 = vst.msk [vmem:[#allocation2 + $0x81] sm:$0xff] %vm592_vm0, %v783_v22  ;;  %v1194_v31 = vld [vmem:[#allocation2 + $0x78] sm:$0xff]  ;;  %v1434_v22 = vld [vmem:[#allocation2 + $0x4a] sm:$0xff]  ;;  %s2882_s21 = sshra.s32 %s2131_s24, 4  ;;  %s2883_s21 = int_to_ptr.hbm [resolvable:$true] %s2882_s21 }
 0x15c   : > { %2377 = vmatmul.msk.bf16.gmra.mxu0 %vm592_vm0, %v3470_v6  ;;  %v3560_v27 = vpack.c.bf16 %v1435_v23, %v1434_v22  ;;  %v1445_v22 = vld [vmem:[#allocation2 + $0xca] sm:$0xff]  ;;  %p2889_p11 = scmp.lt.s32.totalorder %s2883_s21, %s4032_s1 }
 0x15e   : > { %v759_v24 = vpop.f32.mrf.mxu1 }
 0x15f   : > { %v760_v26 = vadd.f32 %v3425_v5, %v759_v24 }
 0x161   : > { %v784_v28 = vmax.f32 %v760_v26, 0.0 }
 0x162   : > { %v890_v30 = vld [vmem:[#allocation2 + $0x81] sm:$0xff] }
 0x163   : > { %v1195_v32 = vld [vmem:[#allocation2 + $0x80] sm:$0xff]  ;;  %801 = vst.msk [vmem:[#allocation2 + $0x91] sm:$0xff] %vm592_vm0, %v784_v28  ;;  %v3498_v33 = vpack.c.bf16 %v890_v30, %v889_v29  ;;  %v842_v28 = vpop.f32.mrf.mxu2 }
 0x164   : > { %v3500_v34 = vpack.c.bf16 %v1195_v32, %v1194_v31  ;;  %v843_v29 = vadd.f32 %v2685_v16, %v842_v28 }
 0x165   : > { %2367 = vmatmul.msk.bf16.gmra.mxu3 %vm592_vm0, %v3498_v33 }
 0x166   : > { %2402 = vmatmul.msk.bf16.gmra.mxu1 %vm592_vm0, %v3500_v34  ;;  %v761_v35 = vpop.f32.mrf.mxu1  ;;  %v846_v30 = vmax.f32 %v843_v29, 0.0 }
 0x167   : > { %v762_v39 = vadd.f32 %v3425_v5, %v761_v35 }
 0x168   : > { %v849_v31 = vmul.f32 %v847_v21, %v846_v30 }
 0x169   : > { %v785_v41 = vmax.f32 %v762_v39, 0.0  ;;  %v1437_v39 = vld [vmem:[#allocation2 + $0x6a] sm:$0xff] }
 0x16a   : > { %v891_v46 = vld [vmem:[#allocation2 + $0x91] sm:$0xff]  ;;  %852 = vst.msk [vmem:[#allocation2 + $0xe1] sm:$0xff] %vm592_vm0, %v849_v31  ;;  %v1322_v31 = vld [vmem:[#allocation2 + $0xc1] sm:$0xff] }
 0x16b   : > { %802 = vst.msk [vmem:[#allocation2 + $0x99] sm:$0xff] %vm592_vm0, %v785_v41  ;;  %v865_v48 = vld [vmem:[#allocation2 + $0x90] sm:$0xff] }
 0x16c   : > { %2378 = vmatmul.msk.bf16.gmra.mxu0 %vm592_vm0, %v3484_v18 }
 0x16e   : > { %v764_v43 = vpop.f32.mrf.mxu1 }
 0x16f   : > { %v765_v44 = vadd.f32 %v3425_v5, %v764_v43  ;;  %v3577_v43 = vpack.c.bf16 %v1437_v39, %v1436_v37 }
 0x171   : > { %v786_v45 = vmax.f32 %v765_v44, 0.0 }
 0x172   : > { %v892_v47 = vld [vmem:[#allocation2 + $0x99] sm:$0xff] }
 0x173   : > { %v866_v49 = vld [vmem:[#allocation2 + $0x98] sm:$0xff]  ;;  %803 = vst.msk [vmem:[#allocation2 + $0xa9] sm:$0xff] %vm592_vm0, %v786_v45  ;;  %v3514_v50 = vpack.c.bf16 %v892_v47, %v891_v46  ;;  %v1439_v47 = vld [vmem:[#allocation2 + $0x82] sm:$0xff] }
 0x174   : > { %v3516_v51 = vpack.c.bf16 %v866_v49, %v865_v48  ;;  %v1441_v59 = vld [vmem:[#allocation2 + $0x9a] sm:$0xff] }
 0x175   : > { %2368 = vmatmul.msk.bf16.gmra.mxu3 %vm592_vm0, %v3514_v50 }
 0x176   : > { %2380 = vmatmul.msk.bf16.vlgmr.msra.gmra.mxu2 %vm592_vm0, %v3516_v51  ;;  %2403 = vmatmul.msk.bf16.gmra.mxu1 %vm592_vm0, %v3516_v51  ;;  %v766_v52 = vpop.f32.mrf.mxu1 }
 0x177   : > { %v767_v55 = vadd.f32 %v3425_v5, %v766_v52  ;;  %1617 = vmatpush.bf16.msra.mxu2 %v2501_v53  ;;  %v1430_v5 = vld [vmem:[#allocation2 + $0x1a] sm:$0xff] }
 0x178   : > { %v1446_v3 = vpack.c.bf16 %v1431_v2, %v1430_v5 }
 0x179   : > { %v787_v58 = vmax.f32 %v767_v55, 0.0 }
 0x17a   : > { %v893_v60 = vld [vmem:[#allocation2 + $0xa9] sm:$0xff] }
 0x17b   : > { %804 = vst.msk [vmem:[#allocation2 + $0xb1] sm:$0xff] %vm592_vm0, %v787_v58  ;;  %v867_v62 = vld [vmem:[#allocation2 + $0xa8] sm:$0xff] }
 0x17c   : > { %2379 = vmatmul.msk.bf16.gmra.mxu0 %vm592_vm0, %v3500_v34 }
 0x182   : > { %v894_v61 = vld [vmem:[#allocation2 + $0xb1] sm:$0xff] }
 0x183   : > { %v868_v63 = vld [vmem:[#allocation2 + $0xb0] sm:$0xff]  ;;  %v3528_v0 = vpack.c.bf16 %v894_v61, %v893_v60 }
 0x184   : > { %v3530_v1 = vpack.c.bf16 %v868_v63, %v867_v62  ;;  %v1443_v8 = vld [vmem:[#allocation2 + $0xb2] sm:$0xff] }
 0x185   : > { %2369 = vmatmul.msk.bf16.gmra.mxu3 %vm592_vm0, %v3528_v0 }
 0x186   : > { %2381 = vmatmul.msk.bf16.gmra.mxu2 %vm592_vm0, %v3530_v1  ;;  %2404 = vmatmul.msk.bf16.gmra.mxu1 %vm592_vm0, %v3530_v1 }
 0x18c   : > { %2422 = vmatmul.msk.bf16.vlgmr.msrb.gmra.mxu0 %vm592_vm0, %v1446_v3 }
 0x195   : > { %2410 = vmatmul.msk.bf16.vlgmr.msrb.gmra.mxu3 %vm592_vm0, %v3444_v38  ;;  %v845_v38 = vmax.f32 %v841_v20, 0.0 }
 0x196   : > { %2386 = vmatmul.msk.bf16.vlgmr.msrb.gmra.mxu2 %vm592_vm0, %v1080_v12  ;;  %2405 = vmatmul.msk.bf16.gmra.mxu1 %vm592_vm0, %v3539_v11 }
 0x197   : > { %v848_v24 = vmul.f32 %v847_v21, %v845_v38  ;;  %v1444_v38 = vld [vmem:[#allocation2 + $0xc2] sm:$0xff] }
 0x198   : > { %v3653_v28 = vpack.c.bf16 %v1445_v22, %v1444_v38 }
 0x199   : > { %851 = vst.msk [vmem:[#allocation2 + $0xd9] sm:$0xff] %vm592_vm0, %v848_v24 }
 0x19c   : > { %2423 = vmatmul.msk.bf16.gmra.mxu0 %vm592_vm0, %v3546_v15 }
 0x1a3   : > { %v3597_v54 = vpop.f32.mrf.mxu1 }
 0x1a5   : > { %2411 = vmatmul.msk.bf16.gmra.mxu3 %vm592_vm0, %v3455_v56 }
 0x1a6   : > { %2387 = vmatmul.msk.bf16.gmra.mxu2 %vm592_vm0, %v1446_v3  ;;  %2446 = vmatmul.msk.bf16.vlgmr.msra.gmra.mxu1 %vm592_vm0, %v3455_v56 }
 0x1a8   : > { %v950_v25 = vpop.f32.mrf.mxu3 }
 0x1a9   : > { %v1024_v26 = vpop.f32.mrf.mxu0 }
 0x1ab   : > { %v3609_v61 = vpop.f32.mrf.mxu1 }
 0x1ac   : > { %2424 = vmatmul.msk.bf16.gmra.mxu0 %vm592_vm0, %v3560_v27 }
 0x1b0   : > { %v952_v32 = vpop.f32.mrf.mxu3  ;;  %v945_v56 = vpop.f32.mrf.mxu2 }
 0x1b1   : > { %v3564_v35 = vpop.f32.mrf.mxu0  ;;  %v3567_v36 = vadd.f32 %v1024_v26, %v945_v56 }
 0x1b3   : > { %v3621_v7 = vpop.f32.mrf.mxu1 }
 0x1b5   : > { %2412 = vmatmul.msk.bf16.gmra.mxu3 %vm592_vm0, %v3468_v4 }
 0x1b6   : > { %2388 = vmatmul.msk.bf16.gmra.mxu2 %vm592_vm0, %v3546_v15  ;;  %2447 = vmatmul.msk.bf16.gmra.mxu1 %vm592_vm0, %v3468_v4  ;;  %v1438_v4 = vld [vmem:[#allocation2 + $0x7a] sm:$0xff] }
 0x1b7   : > { %v3593_v53 = vpack.c.bf16 %v1439_v47, %v1438_v4  ;;  %v2504_v4 = vld [vmem:[#allocation12] sm:$0xff] }
 0x1b8   : > { %v955_v40 = vpop.f32.mrf.mxu3  ;;  %v947_v16 = vpop.f32.mrf.mxu2  ;;  %2006 = vmatpush.bf16.msra.mxu0 %v2504_v4 }
 0x1b9   : > { %v1029_v41 = vpop.f32.mrf.mxu0  ;;  %v1027_v38 = vadd.f32 %v3564_v35, %v947_v16 }
 0x1ba   : > { %v3575_v42 = vadd.f32 %v1029_v41, %v950_v25 }
 0x1bb   : > { %v3635_v14 = vpop.f32.mrf.mxu1 }
 0x1bc   : > { %2425 = vmatmul.msk.bf16.gmra.mxu0 %vm592_vm0, %v3577_v43 }
 0x1c0   : > { %v3581_v44 = vpop.f32.mrf.mxu3 }
 0x1c1   : > { %v1031_v45 = vpop.f32.mrf.mxu0 }
 0x1c2   : > { %v3583_v46 = vadd.f32 %v1031_v45, %v952_v32 }
 0x1c5   : > { %2413 = vmatmul.msk.bf16.gmra.mxu3 %vm592_vm0, %v3482_v17 }
 0x1c6   : > { %2389 = vmatmul.msk.bf16.gmra.mxu2 %vm592_vm0, %v3560_v27  ;;  %2448 = vmatmul.msk.bf16.gmra.mxu1 %vm592_vm0, %v3482_v17  ;;  %v1440_v17 = vld [vmem:[#allocation2 + $0x92] sm:$0xff] }
 0x1c7   : > { %v3613_v5 = vpack.c.bf16 %v1441_v59, %v1440_v17  ;;  %v1690_v17 = vld [vmem:[#allocation2 + $0xe1] sm:$0xff] }
 0x1c8   : > { %v960_v48 = vpop.f32.mrf.mxu3 }
 0x1c9   : > { %v1034_v49 = vpop.f32.mrf.mxu0 }
 0x1ca   : > { %v3591_v52 = vadd.f32 %v1034_v49, %v955_v40  ;;  %v1689_v49 = vld [vmem:[#allocation2 + $0xd9] sm:$0xff] }
 0x1cc   : > { %2426 = vmatmul.msk.bf16.gmra.mxu0 %vm592_vm0, %v3593_v53 }
 0x1d0   : > { %v3599_v55 = vpop.f32.mrf.mxu3 }
 0x1d1   : > { %v3601_v58 = vpop.f32.mrf.mxu0 }
 0x1d5   : > { %2414 = vmatmul.msk.bf16.gmra.mxu3 %vm592_vm0, %v3498_v33 }
 0x1d6   : > { %2390 = vmatmul.msk.bf16.gmra.mxu2 %vm592_vm0, %v3577_v43  ;;  %2449 = vmatmul.msk.bf16.gmra.mxu1 %vm592_vm0, %v3498_v33  ;;  %v1442_v33 = vld [vmem:[#allocation2 + $0xaa] sm:$0xff] }
 0x1d7   : > { %v3631_v13 = vpack.c.bf16 %v1443_v8, %v1442_v33 }
 0x1d8   : > { %v965_v60 = vpop.f32.mrf.mxu3 }
 0x1d9   : > { %v1039_v62 = vpop.f32.mrf.mxu0 }
 0x1da   : > { %v3611_v63 = vadd.f32 %v1039_v62, %v960_v48 }
 0x1dc   : > { %2427 = vmatmul.msk.bf16.gmra.mxu0 %vm592_vm0, %v3613_v5 }
 0x1e0   : > { %v3617_v2 = vpop.f32.mrf.mxu3 }
 0x1e1   : > { %v3619_v3 = vpop.f32.mrf.mxu0 }
 0x1e5   : > { %2415 = vmatmul.msk.bf16.gmra.mxu3 %vm592_vm0, %v3514_v50 }
 0x1e6   : > { %2391 = vmatmul.msk.bf16.gmra.mxu2 %vm592_vm0, %v3593_v53  ;;  %2450 = vmatmul.msk.bf16.gmra.mxu1 %vm592_vm0, %v3514_v50  ;;  %v3647_v50 = vpop.f32.mrf.mxu1 }
 0x1e8   : > { %v970_v9 = vpop.f32.mrf.mxu3 }
 0x1e9   : > { %v1044_v10 = vpop.f32.mrf.mxu0 }
 0x1ea   : > { %v3629_v12 = vadd.f32 %v1044_v10, %v965_v60  ;;  %v1698_v60 = vpack.c.bf16 %v1690_v17, %v1689_v49 }
 0x1ec   : > { %2428 = vmatmul.msk.bf16.gmra.mxu0 %vm592_vm0, %v3631_v13 }
 0x1ee   : > { %v1264_v32 = vpop.f32.mrf.mxu1 }
 0x1f0   : > { %v3637_v19 = vpop.f32.mrf.mxu3 }
 0x1f1   : > { %v3639_v20 = vpop.f32.mrf.mxu0 }
 0x1f5   : > { %2416 = vmatmul.msk.bf16.gmra.mxu3 %vm592_vm0, %v3528_v0 }
 0x1f6   : > { %2392 = vmatmul.msk.bf16.gmra.mxu2 %vm592_vm0, %v3613_v5  ;;  %2451 = vmatmul.msk.bf16.gmra.mxu1 %vm592_vm0, %v3528_v0  ;;  %v1323_v0 = vld [vmem:[#allocation2 + $0xc9] sm:$0xff]  ;;  %v1267_v45 = vpop.f32.mrf.mxu1 }
 0x1f7   : > { %v1331_v37 = vpack.c.bf16 %v1323_v0, %v1322_v31 }
 0x1f8   : > { %v975_v23 = vpop.f32.mrf.mxu3 }
 0x1f9   : > { %v1054_v21 = vpop.f32.mrf.mxu2  ;;  %v1049_v25 = vpop.f32.mrf.mxu0 }
 0x1fa   : > { %v3649_v24 = vadd.f32 %v1054_v21, %v975_v23  ;;  %v3651_v26 = vadd.f32 %v1049_v25, %v970_v9 }
 0x1fc   : > { %2429 = vmatmul.msk.bf16.gmra.mxu0 %vm592_vm0, %v3653_v28 }
 0x1fe   : > { %v1269_v62 = vpop.f32.mrf.mxu1 }
 0x200   : > { %v977_v30 = vpop.f32.mrf.mxu3 }
 0x201   : > { %v1056_v29 = vpop.f32.mrf.mxu2 }
 0x202   : > { %v3657_v56 = vadd.f32 %v1056_v29, %v977_v30 }
 0x205   : > { %2417 = vmatmul.msk.bf16.gmra.mxu3 %vm592_vm0, %v1331_v37 }
 0x206   : > { %2393 = vmatmul.msk.bf16.gmra.mxu2 %vm592_vm0, %v3631_v13  ;;  %2452 = vmatmul.msk.bf16.gmra.mxu1 %vm592_vm0, %v1331_v37  ;;  %v1272_v35 = vpop.f32.mrf.mxu1 }
 0x208   : > { %v980_v40 = vpop.f32.mrf.mxu3 }
 0x209   : > { %v1059_v39 = vpop.f32.mrf.mxu2 }
 0x20a   : > { %v3663_v41 = vadd.f32 %v1059_v39, %v980_v40 }
 0x210   : > { %v982_v48 = vpop.f32.mrf.mxu3 }
 0x211   : > { %v1061_v47 = vpop.f32.mrf.mxu2 }
 0x212   : > { %v3665_v59 = vadd.f32 %v1061_v47, %v982_v48 }
 0x215   : > { %2458 = vmatmul.msk.bf16.vlgmr.msra.gmra.mxu3 %vm592_vm0, %v3546_v15 }
 0x216   : > { %2434 = vmatmul.msk.bf16.vlgmr.msra.gmra.mxu2 %vm592_vm0, %v3457_v57  ;;  %2453 = vmatmul.msk.bf16.gmra.mxu1 %vm592_vm0, %v1698_v60 }
 0x218   : > { %v1374_v9 = vpop.f32.mrf.mxu3 }
 0x219   : > { %v1130_v33 = vpop.f32.mrf.mxu2 }
 0x21a   : > { %v1170_v8 = vadd.f32 %v1130_v33, %v3567_v36 }
 0x21c   : > { %v1292_v10 = vadd.f32 %v3597_v54, %v1170_v8 }
 0x21e   : > { %v3674_v21 = vadd.f32 %v1374_v9, %v1292_v10 }
 0x220   : > { %v1376_v25 = vpop.f32.mrf.mxu3 }
 0x221   : > { %v1132_v22 = vpop.f32.mrf.mxu2 }
 0x222   : > { %v1171_v23 = vadd.f32 %v1132_v22, %v1027_v38 }
 0x224   : > { %v1293_v57 = vadd.f32 %v3609_v61, %v1171_v23 }
 0x225   : > { %2459 = vmatmul.msk.bf16.gmra.mxu3 %vm592_vm0, %v3560_v27 }
 0x226   : > { %v3678_v29 = vadd.f32 %v1376_v25, %v1293_v57  ;;  %2435 = vmatmul.msk.bf16.gmra.mxu2 %vm592_vm0, %v3470_v6  ;;  %v1274_v6 = vpop.f32.mrf.mxu1 }
 0x228   : > { %v1379_v54 = vpop.f32.mrf.mxu3 }
 0x229   : > { %v1135_v15 = vpop.f32.mrf.mxu2 }
 0x22a   : > { %v1172_v36 = vadd.f32 %v1135_v15, %v3575_v42 }
 0x22c   : > { %v1294_v30 = vadd.f32 %v3621_v7, %v1172_v36 }
 0x22e   : > { %v3686_v16 = vadd.f32 %v1379_v54, %v1294_v30 }
 0x230   : > { %v1381_v0 = vpop.f32.mrf.mxu3 }
 0x231   : > { %v1137_v31 = vpop.f32.mrf.mxu2 }
 0x232   : > { %v1173_v61 = vadd.f32 %v1137_v31, %v3583_v46  ;;  %v1037_v46 = vadd.f32 %v3601_v58, %v3581_v44  ;;  %v1042_v58 = vadd.f32 %v3619_v3, %v3599_v55  ;;  %v1047_v3 = vadd.f32 %v3639_v20, %v3617_v2 }
 0x234   : > { %v1295_v37 = vadd.f32 %v3635_v14, %v1173_v61  ;;  %v1277_v14 = vpop.f32.mrf.mxu1 }
 0x235   : > { %2460 = vmatmul.msk.bf16.gmra.mxu3 %vm592_vm0, %v3577_v43 }
 0x236   : > { %v3690_v39 = vadd.f32 %v1381_v0, %v1295_v37  ;;  %2436 = vmatmul.msk.bf16.gmra.mxu2 %vm592_vm0, %v3484_v18 }
 0x238   : > { %v1384_v7 = vpop.f32.mrf.mxu3 }
 0x239   : > { %v1140_v27 = vpop.f32.mrf.mxu2 }
 0x23a   : > { %v1174_v42 = vadd.f32 %v1140_v27, %v3591_v52 }
 0x23c   : > { %v1296_v40 = vadd.f32 %v3647_v50, %v1174_v42  ;;  %v1279_v60 = vpop.f32.mrf.mxu1 }
 0x23e   : > { %v3698_v4 = vadd.f32 %v1384_v7, %v1296_v40 }
 0x240   : > { %v1386_v49 = vpop.f32.mrf.mxu3 }
 0x241   : > { %v1142_v47 = vpop.f32.mrf.mxu2 }
 0x242   : > { %v1175_v48 = vadd.f32 %v1142_v47, %v1037_v46  ;;  %v1568_v47 = vld [vmem:[#allocation2 + $0xe0] sm:$0xff] }
 0x244   : > { %v1297_v18 = vadd.f32 %v1264_v32, %v1175_v48  ;;  %v1282_v38 = vpop.f32.mrf.mxu1 }
 0x245   : > { %2461 = vmatmul.msk.bf16.gmra.mxu3 %vm592_vm0, %v3593_v53 }
 0x246   : > { %v3702_v17 = vadd.f32 %v1386_v49, %v1297_v18  ;;  %2437 = vmatmul.msk.bf16.gmra.mxu2 %vm592_vm0, %v3500_v34  ;;  %v1811_v18 = vld [vmem:[#allocation2 + $0xda] sm:$0xff] }
 0x248   : > { %v1389_v50 = vpop.f32.mrf.mxu3 }
 0x249   : > { %v1145_v43 = vpop.f32.mrf.mxu2 }
 0x24a   : > { %v1176_v52 = vadd.f32 %v1145_v43, %v3611_v63 }
 0x24c   : > { %v1298_v33 = vadd.f32 %v1267_v45, %v1176_v52  ;;  %v1284_v55 = vpop.f32.mrf.mxu1 }
 0x24e   : > { %v3709_v44 = vadd.f32 %v1389_v50, %v1298_v33 }
 0x250   : > { %v1391_v9 = vpop.f32.mrf.mxu3 }
 0x251   : > { %v1147_v32 = vpop.f32.mrf.mxu2 }
 0x252   : > { %v1177_v8 = vadd.f32 %v1147_v32, %v1042_v58 }
 0x254   : > { %v1299_v10 = vadd.f32 %v1269_v62, %v1177_v8 }
 0x255   : > { %2462 = vmatmul.msk.bf16.gmra.mxu3 %vm592_vm0, %v3613_v5 }
 0x256   : > { %v3713_v34 = vadd.f32 %v1391_v9, %v1299_v10  ;;  %2438 = vmatmul.msk.bf16.gmra.mxu2 %vm592_vm0, %v3516_v51  ;;  %v1287_v51 = vpop.f32.mrf.mxu1 }
 0x258   : > { %v1394_v45 = vpop.f32.mrf.mxu3 }
 0x259   : > { %v1150_v53 = vpop.f32.mrf.mxu2 }
 0x25a   : > { %v1178_v63 = vadd.f32 %v1150_v53, %v3629_v12 }
 0x25c   : > { %v1300_v22 = vadd.f32 %v1272_v35, %v1178_v63  ;;  %v1051_v35 = vpop.f32.mrf.mxu0 }
 0x25d   : > { %v1052_v20 = vadd.f32 %v1051_v35, %v3637_v19 }
 0x25e   : > { %v3720_v23 = vadd.f32 %v1394_v45, %v1300_v22  ;;  %v1289_v37 = vpop.f32.mrf.mxu1 }
 0x260   : > { %v1396_v57 = vpop.f32.mrf.mxu3 }
 0x261   : > { %v1152_v62 = vpop.f32.mrf.mxu2 }
 0x262   : > { %v1179_v25 = vadd.f32 %v1152_v62, %v1047_v3 }
 0x264   : > { %v1301_v15 = vadd.f32 %v1274_v6, %v1179_v25 }
 0x265   : > { %2463 = vmatmul.msk.bf16.gmra.mxu3 %vm592_vm0, %v3631_v13  ;;  %v1496_v13 = vpop.f32.mrf.mxu0 }
 0x266   : > { %v3724_v36 = vadd.f32 %v1396_v57, %v1301_v15  ;;  %2439 = vmatmul.msk.bf16.gmra.mxu2 %vm592_vm0, %v3530_v1  ;;  %v1741_v19 = vpop.f32.mrf.mxu1  ;;  %v1536_v3 = vadd.f32 %v1496_v13, %v3674_v21 }
 0x268   : > { %v1399_v54 = vpop.f32.mrf.mxu3 }
 0x269   : > { %v1155_v5 = vpop.f32.mrf.mxu2 }
 0x26a   : > { %v1180_v12 = vadd.f32 %v1155_v5, %v3651_v26 }
 0x26c   : > { %v1302_v30 = vadd.f32 %v1277_v14, %v1180_v12  ;;  %v1567_v14 = vld [vmem:[#allocation2 + $0xd8] sm:$0xff] }
 0x26d   : > { %v1498_v43 = vpop.f32.mrf.mxu0 }
 0x26e   : > { %v3731_v2 = vadd.f32 %v1399_v54, %v1302_v30 }
 0x270   : > { %v1401_v0 = vpop.f32.mrf.mxu3 }
 0x271   : > { %v1157_v31 = vpop.f32.mrf.mxu2 }
 0x272   : > { %v1181_v61 = vadd.f32 %v1157_v31, %v1052_v20 }
 0x274   : > { %v1303_v6 = vadd.f32 %v1279_v60, %v1181_v61 }
 0x275   : > { %2464 = vmatmul.msk.bf16.gmra.mxu3 %vm592_vm0, %v3653_v28  ;;  %v1576_v28 = vpack.c.bf16 %v1568_v47, %v1567_v14 }
 0x276   : > { %v3734_v1 = vadd.f32 %v1401_v0, %v1303_v6  ;;  %2440 = vmatmul.msk.bf16.gmra.mxu2 %vm592_vm0, %v3539_v11  ;;  %v1812_v11 = vld [vmem:[#allocation2 + $0xe2] sm:$0xff] }
 0x277   : > { %v1820_v50 = vpack.c.bf16 %v1812_v11, %v1811_v18 }
 0x278   : > { %v1404_v42 = vpop.f32.mrf.mxu3 }
 0x279   : > { %v1160_v26 = vpop.f32.mrf.mxu2 }
 0x27a   : > { %v1182_v27 = vadd.f32 %v1160_v26, %v3649_v24  ;;  %v1743_v24 = vpop.f32.mrf.mxu1 }
 0x27c   : > { %v1304_v7 = vadd.f32 %v1282_v38, %v1182_v27 }
 0x27e   : > { %v3741_v40 = vadd.f32 %v1404_v42, %v1304_v7 }
 0x280   : > { %v1406_v49 = vpop.f32.mrf.mxu3 }
 0x281   : > { %v1162_v46 = vpop.f32.mrf.mxu2 }
 0x282   : > { %v1183_v48 = vadd.f32 %v1162_v46, %v3657_v56  ;;  %v1501_v56 = vpop.f32.mrf.mxu0  ;;  %v1746_v10 = vpop.f32.mrf.mxu1 }
 0x284   : > { %v1305_v52 = vadd.f32 %v1284_v55, %v1183_v48 }
 0x285   : > { %2465 = vmatmul.msk.bf16.gmra.mxu3 %vm592_vm0, %v1820_v50 }
 0x286   : > { %v3744_v60 = vadd.f32 %v1406_v49, %v1305_v52  ;;  %2441 = vmatmul.msk.bf16.gmra.mxu2 %vm592_vm0, %v1576_v28 }
 0x288   : > { %v1409_v32 = vpop.f32.mrf.mxu3 }
 0x289   : > { %v1165_v33 = vpop.f32.mrf.mxu2 }
 0x28a   : > { %v1184_v58 = vadd.f32 %v1165_v33, %v3663_v41  ;;  %v1503_v55 = vpop.f32.mrf.mxu0  ;;  %v1748_v41 = vpop.f32.mrf.mxu1 }
 0x28b   : > { %v1539_v14 = vadd.f32 %v1503_v55, %v3690_v39 }
 0x28c   : > { %v1306_v8 = vadd.f32 %v1287_v51, %v1184_v58  ;;  %v1537_v51 = vadd.f32 %v1498_v43, %v3678_v29 }
 0x28e   : > { %v3749_v9 = vadd.f32 %v1409_v32, %v1306_v8 }
 0x290   : > { %v1411_v63 = vpop.f32.mrf.mxu3 }
 0x291   : > { %v1167_v38 = vpop.f32.mrf.mxu2 }
 0x292   : > { %v1185_v53 = vadd.f32 %v1167_v38, %v3665_v59  ;;  %v1506_v5 = vpop.f32.mrf.mxu0  ;;  %v3759_v59 = vld [vmem:[%s4029_s2] ss:$0 sm:$0xff]  ;;  %v1751_v31 = vpop.f32.mrf.mxu1  ;;  %s2884_s2 = scalar_lea.hbm %s2883_s21, 128 }
 0x293   : > { %v1540_v50 = vadd.f32 %v1506_v5, %v3698_v4  ;;  %p2885_p0 = scmp.ne.s32.totalorder %s2883_s21, %s2884_s2  ;;  %p2890_p13 = scmp.lt.s32.totalorder %s2888_s6, %s2884_s2 }
 0x294   : > { %v1307_v45 = vadd.f32 %v1289_v37, %v1185_v53  ;;  %v1538_v37 = vadd.f32 %v1501_v56, %v3686_v16 }
 0x295   : > { %p2886_p6 = pnand %p2885_p0, %p3217_p2  ;;  %p2891_p10 = por %p2890_p13, %p2889_p11 }
 0x296   : > { %v3752_v22 = vadd.f32 %v1411_v63, %v1307_v45 }
 0x297   : > { %p2887_p8 = pneg %p2886_p6 }
 0x298   : > { %v1863_v57 = vpop.f32.mrf.mxu3 }
 0x299   : > { %v1619_v62 = vpop.f32.mrf.mxu2  ;;  %p2892_p5 = pnand %p2891_p10, %p2887_p8 }
 0x29a   : > { %v1659_v25 = vadd.f32 %v1619_v62, %v1536_v3  ;;  %v1508_v42 = vpop.f32.mrf.mxu0  ;;  %v1753_v46 = vpop.f32.mrf.mxu1 }
 0x29b   : > { %v1541_v53 = vadd.f32 %v1508_v42, %v3702_v17 }
 0x29c   : > { %v1781_v15 = vadd.f32 %v1741_v19, %v1659_v25 }
 0x29e   : > { %v1903_v54 = vadd.f32 %v1863_v57, %v1781_v15 }
 0x2a0   : > { %v1865_v35 = vpop.f32.mrf.mxu3  ;;  %v1923_v21 = vadd.f32 %v3759_v59, %v1903_v54 }
 0x2a1   : > { %v1621_v12 = vpop.f32.mrf.mxu2 }
 0x2a2   : > { %v1660_v30 = vadd.f32 %v1621_v12, %v1537_v51  ;;  %v1939_v6 = vmax.f32 %v1923_v21, 0.0  ;;  %v1511_v43 = vpop.f32.mrf.mxu0 }
 0x2a3   : > { %v1542_v15 = vadd.f32 %v1511_v43, %v3709_v44 }
 0x2a4   : > { %v1782_v20 = vadd.f32 %v1743_v24, %v1660_v30  ;;  %v1756_v24 = vpop.f32.mrf.mxu1 }
 0x2a6   : > { %v1904_v61 = vadd.f32 %v1865_v35, %v1782_v20 }
 0x2a8   : > { %v1924_v0 = vadd.f32 %v3759_v59, %v1904_v61  ;;  %v1868_v27 = vpop.f32.mrf.mxu3 }
 0x2a9   : > { %v1624_v29 = vpop.f32.mrf.mxu2 }
 0x2aa   : > { %v1940_v13 = vmax.f32 %v1924_v0, 0.0  ;;  %v1661_v26 = vadd.f32 %v1624_v29, %v1538_v37  ;;  %v1513_v38 = vpop.f32.mrf.mxu0 }
 0x2ab   : > { %v1543_v21 = vadd.f32 %v1513_v38, %v3713_v34 }
 0x2ac   : > { %v1955_v7 = vpack.c.bf16 %v1940_v13, %v1939_v6  ;;  %v1783_v19 = vadd.f32 %v1746_v10, %v1661_v26  ;;  %v1758_v62 = vpop.f32.mrf.mxu1 }
 0x2ae   : > { %2470 = vmatmul.msk.bf16.vlgmr.msra.gmra.mxu0 %vm592_vm0, %v1955_v7  ;;  %v1905_v48 = vadd.f32 %v1868_v27, %v1783_v19 }
 0x2b0   : > { %v1870_v18 = vpop.f32.mrf.mxu3  ;;  %v1925_v16 = vadd.f32 %v3759_v59, %v1905_v48 }
 0x2b1   : > { %v1626_v47 = vpop.f32.mrf.mxu2 }
 0x2b2   : > { %v1662_v49 = vadd.f32 %v1626_v47, %v1539_v14  ;;  %v1941_v58 = vmax.f32 %v1925_v16, 0.0  ;;  %v1516_v51 = vpop.f32.mrf.mxu0 }
 0x2b3   : > { %v1544_v7 = vadd.f32 %v1516_v51, %v3720_v23 }
 0x2b4   : > { %v1784_v11 = vadd.f32 %v1748_v41, %v1662_v49  ;;  %v1761_v20 = vpop.f32.mrf.mxu1 }
 0x2b6   : > { %v1906_v52 = vadd.f32 %v1870_v18, %v1784_v11 }
 0x2b8   : > { %v1926_v28 = vadd.f32 %v3759_v59, %v1906_v52  ;;  %v1873_v56 = vpop.f32.mrf.mxu3 }
 0x2b9   : > { %v1629_v33 = vpop.f32.mrf.mxu2 }
 0x2ba   : > { %v1942_v32 = vmax.f32 %v1926_v28, 0.0  ;;  %v1663_v8 = vadd.f32 %v1629_v33, %v1540_v50  ;;  %v1518_v6 = vpop.f32.mrf.mxu0 }
 0x2bb   : > { %v1545_v11 = vadd.f32 %v1518_v6, %v3724_v36 }
 0x2bc   : > { %v1956_v39 = vpack.c.bf16 %v1942_v32, %v1941_v58  ;;  %v1785_v10 = vadd.f32 %v1751_v31, %v1663_v8  ;;  %v1763_v27 = vpop.f32.mrf.mxu1 }
 0x2be   : > { %2471 = vmatmul.msk.bf16.gmra.mxu0 %vm592_vm0, %v1956_v39  ;;  %v1907_v45 = vadd.f32 %v1873_v56, %v1785_v10 }
 0x2c0   : > { %v1875_v3 = vpop.f32.mrf.mxu3  ;;  %v1927_v4 = vadd.f32 %v3759_v59, %v1907_v45 }
 0x2c1   : > { %v1631_v63 = vpop.f32.mrf.mxu2 }
 0x2c2   : > { %v1664_v55 = vadd.f32 %v1631_v63, %v1541_v53  ;;  %v1943_v12 = vmax.f32 %v1927_v4, 0.0  ;;  %v1521_v49 = vpop.f32.mrf.mxu0 }
 0x2c3   : > { %v1546_v8 = vadd.f32 %v1521_v49, %v3731_v2 }
 0x2c4   : > { %v1786_v25 = vadd.f32 %v1753_v46, %v1664_v55  ;;  %v1766_v43 = vpop.f32.mrf.mxu1 }
 0x2c6   : > { %v1908_v57 = vadd.f32 %v1875_v3, %v1786_v25 }
 0x2c8   : > { %v1928_v41 = vadd.f32 %v3759_v59, %v1908_v57  ;;  %v1878_v35 = vpop.f32.mrf.mxu3 }
 0x2c9   : > { %v1634_v5 = vpop.f32.mrf.mxu2 }
 0x2ca   : > { %v1944_v54 = vmax.f32 %v1928_v41, 0.0  ;;  %v1665_v30 = vadd.f32 %v1634_v5, %v1542_v15  ;;  %v1523_v58 = vpop.f32.mrf.mxu0 }
 0x2cb   : > { %v1547_v55 = vadd.f32 %v1523_v58, %v3734_v1 }
 0x2cc   : > { %v1957_v17 = vpack.c.bf16 %v1944_v54, %v1943_v12  ;;  %v1787_v31 = vadd.f32 %v1756_v24, %v1665_v30  ;;  %v1768_v36 = vpop.f32.mrf.mxu1 }
 0x2ce   : > { %2472 = vmatmul.msk.bf16.gmra.mxu0 %vm592_vm0, %v1957_v17  ;;  %v1909_v0 = vadd.f32 %v1878_v35, %v1787_v31 }
 0x2d0   : > { %v1880_v29 = vpop.f32.mrf.mxu3  ;;  %v1929_v44 = vadd.f32 %v3759_v59, %v1909_v0 }
 0x2d1   : > { %v1636_v61 = vpop.f32.mrf.mxu2 }
 0x2d2   : > { %v1666_v37 = vadd.f32 %v1636_v61, %v1543_v21  ;;  %v1945_v46 = vmax.f32 %v1929_v44, 0.0  ;;  %v1526_v3 = vpop.f32.mrf.mxu0 }
 0x2d3   : > { %v1548_v12 = vadd.f32 %v1526_v3, %v3741_v40 }
 0x2d4   : > { %v1788_v13 = vadd.f32 %v1758_v62, %v1666_v37  ;;  %v1771_v15 = vpop.f32.mrf.mxu1 }
 0x2d6   : > { %v1910_v26 = vadd.f32 %v1880_v29, %v1788_v13 }
 0x2d8   : > { %v1930_v42 = vadd.f32 %v3759_v59, %v1910_v26  ;;  %v1883_v48 = vpop.f32.mrf.mxu3 }
 0x2d9   : > { %v1639_v19 = vpop.f32.mrf.mxu2 }
 0x2da   : > { %v1946_v14 = vmax.f32 %v1930_v42, 0.0  ;;  %v1667_v47 = vadd.f32 %v1639_v19, %v1544_v7  ;;  %v1528_v1 = vpop.f32.mrf.mxu0 }
 0x2db   : > { %v1549_v0 = vadd.f32 %v1528_v1, %v3744_v60  ;;  %v2053_v1 = vld [vmem:[%s3355_s0 + $0x28] sm:$0xff] }
 0x2dc   : > { %v1958_v34 = vpack.c.bf16 %v1946_v14, %v1945_v46  ;;  %v1789_v18 = vadd.f32 %v1761_v20, %v1667_v47  ;;  %v1773_v61 = vpop.f32.mrf.mxu1 }
 0x2de   : > { %2473 = vmatmul.msk.bf16.gmra.mxu0 %vm592_vm0, %v1958_v34  ;;  %v1911_v52 = vadd.f32 %v1883_v48, %v1789_v18 }
 0x2e0   : > { %v1885_v50 = vpop.f32.mrf.mxu3  ;;  %v1931_v23 = vadd.f32 %v3759_v59, %v1911_v52 }
 0x2e1   : > { %v1641_v16 = vpop.f32.mrf.mxu2 }
 0x2e2   : > { %v1668_v28 = vadd.f32 %v1641_v16, %v1545_v11  ;;  %v1947_v39 = vmax.f32 %v1931_v23, 0.0  ;;  %v1531_v26 = vpop.f32.mrf.mxu0 }
 0x2e3   : > { %v1550_v7 = vadd.f32 %v1531_v26, %v3749_v9  ;;  %v2055_v26 = vld [vmem:[%s3355_s0 + $0x38] sm:$0xff] }
 0x2e4   : > { %v1790_v24 = vadd.f32 %v1763_v27, %v1668_v28  ;;  %v1776_v19 = vpop.f32.mrf.mxu1 }
 0x2e6   : > { %v1912_v33 = vadd.f32 %v1885_v50, %v1790_v24 }
 0x2e8   : > { %v1932_v32 = vadd.f32 %v3759_v59, %v1912_v33  ;;  %v1888_v53 = vpop.f32.mrf.mxu3 }
 0x2e9   : > { %v1644_v56 = vpop.f32.mrf.mxu2 }
 0x2ea   : > { %v1948_v10 = vmax.f32 %v1932_v32, 0.0  ;;  %v1669_v38 = vadd.f32 %v1644_v56, %v1546_v8  ;;  %v1533_v18 = vpop.f32.mrf.mxu0 }
 0x2eb   : > { %v1551_v11 = vadd.f32 %v1533_v18, %v3752_v22  ;;  %v3802_v22 = vld [vmem:[%s4030_s27] ss:$0 sm:$0xff] }
 0x2ec   : > { %v1959_v63 = vpack.c.bf16 %v1948_v10, %v1947_v39  ;;  %v1791_v45 = vadd.f32 %v1766_v43, %v1669_v38  ;;  %v1778_v28 = vpop.f32.mrf.mxu1  ;;  %v2048_v39 = vld [vmem:[%s3355_s0] sm:$0xff] }
 0x2ee   : > { %2474 = vmatmul.msk.bf16.gmra.mxu0 %vm592_vm0, %v1959_v63  ;;  %v1913_v25 = vadd.f32 %v1888_v53, %v1791_v45 }
 0x2f0   : > { %v1890_v57 = vpop.f32.mrf.mxu3  ;;  %v1933_v2 = vadd.f32 %v3759_v59, %v1913_v25 }
 0x2f1   : > { %v1646_v62 = vpop.f32.mrf.mxu2 }
 0x2f2   : > { %v1670_v4 = vadd.f32 %v1646_v62, %v1547_v55  ;;  %v1949_v30 = vmax.f32 %v1933_v2, 0.0  ;;  %v2050_v62 = vld [vmem:[%s3355_s0 + $0x10] sm:$0xff] }
 0x2f4   : > { %v1792_v41 = vadd.f32 %v1768_v36, %v1670_v4  ;;  %v2049_v36 = vld [vmem:[%s3355_s0 + $0x8] sm:$0xff] }
 0x2f6   : > { %v1914_v51 = vadd.f32 %v1890_v57, %v1792_v41 }
 0x2f8   : > { %v1934_v5 = vadd.f32 %v3759_v59, %v1914_v51  ;;  %v1893_v20 = vpop.f32.mrf.mxu3 }
 0x2f9   : > { %v1649_v54 = vpop.f32.mrf.mxu2 }
 0x2fa   : > { %v1950_v35 = vmax.f32 %v1934_v5, 0.0  ;;  %v1671_v17 = vadd.f32 %v1649_v54, %v1548_v12  ;;  %v2052_v54 = vld [vmem:[%s3355_s0 + $0x20] sm:$0xff] }
 0x2fc   : > { %v1960_v31 = vpack.c.bf16 %v1950_v35, %v1949_v30  ;;  %v1793_v21 = vadd.f32 %v1771_v15, %v1671_v17  ;;  %v2051_v15 = vld [vmem:[%s3355_s0 + $0x18] sm:$0xff] }
 0x2fe   : > { %2475 = vmatmul.msk.bf16.gmra.mxu0 %vm592_vm0, %v1960_v31  ;;  %v1915_v29 = vadd.f32 %v1893_v20, %v1793_v21 }
 0x300   : > { %v1895_v13 = vpop.f32.mrf.mxu3  ;;  %v1935_v40 = vadd.f32 %v3759_v59, %v1915_v29 }
 0x301   : > { %v1651_v37 = vpop.f32.mrf.mxu2 }
 0x302   : > { %v1672_v6 = vadd.f32 %v1651_v37, %v1549_v0  ;;  %v1951_v14 = vmax.f32 %v1935_v40, 0.0  ;;  %v2054_v37 = vld [vmem:[%s3355_s0 + $0x30] sm:$0xff] }
 0x304   : > { %v1794_v44 = vadd.f32 %v1773_v61, %v1672_v6 }
 0x306   : > { %v1916_v27 = vadd.f32 %v1895_v13, %v1794_v44 }
 0x308   : > { %v1936_v42 = vadd.f32 %v3759_v59, %v1916_v27  ;;  %v1898_v34 = vpop.f32.mrf.mxu3 }
 0x309   : > { %v1654_v46 = vpop.f32.mrf.mxu2 }
 0x30a   : > { %v1952_v47 = vmax.f32 %v1936_v42, 0.0  ;;  %v1673_v48 = vadd.f32 %v1654_v46, %v1550_v7 }
 0x30c   : > { %v1961_v60 = vpack.c.bf16 %v1952_v47, %v1951_v14  ;;  %v1795_v49 = vadd.f32 %v1776_v19, %v1673_v48  ;;  %v2056_v19 = vld [vmem:[%s3355_s0 + $0x40] sm:$0xff] }
 0x30e   : > { %2476 = vmatmul.msk.bf16.gmra.mxu0 %vm592_vm0, %v1961_v60  ;;  %v1917_v16 = vadd.f32 %v1898_v34, %v1795_v49  ;;  %v2057_v34 = vld [vmem:[%s3355_s0 + $0x48] sm:$0xff] }
 0x310   : > { %v1900_v50 = vpop.f32.mrf.mxu3  ;;  %v1937_v24 = vadd.f32 %v3759_v59, %v1917_v16 }
 0x311   : > { %v1656_v43 = vpop.f32.mrf.mxu2 }
 0x312   : > { %v1674_v52 = vadd.f32 %v1656_v43, %v1551_v11  ;;  %v1953_v58 = vmax.f32 %v1937_v24, 0.0  ;;  %v2058_v43 = vld [vmem:[%s3355_s0 + $0x50] sm:$0xff] }
 0x314   : > { %v1796_v9 = vadd.f32 %v1778_v28, %v1674_v52 }
 0x316   : > { %v1918_v23 = vadd.f32 %v1900_v50, %v1796_v9  ;;  %v2059_v50 = vld [vmem:[%s3355_s0 + $0x58] sm:$0xff] }
 0x318   : > { %v1938_v33 = vadd.f32 %v3759_v59, %v1918_v23 }
 0x31a   : > { %v1954_v32 = vmax.f32 %v1938_v33, 0.0 }
 0x31c   : > { %v1962_v8 = vpack.c.bf16 %v1954_v32, %v1953_v58  ;;  %v2060_v32 = vld [vmem:[%s3355_s0 + $0x60] sm:$0xff] }
 0x31e   : > { %2477 = vmatmul.msk.bf16.gmra.mxu0 %vm592_vm0, %v1962_v8 }
 0x32b   : > { %v2008_v56 = vpop.f32.mrf.mxu0 }
 0x32c   : > { %v2009_v10 = vadd.f32 %v3802_v22, %v2008_v56 }
 0x32e   : > { %v2064_v38 = vadd.f32 %v2048_v39, %v2009_v10 }
 0x330   : > { %v2080_v53 = vmax.f32 %v2064_v38, 0.0  ;;  %v2061_v38 = vld [vmem:[%s3355_s0 + $0x68] sm:$0xff] }
 0x332   : > { %2096 = vst.msk [vmem:[%s3807_s25] sm:$0xff] %vm592_vm0, %v2080_v53 }
 0x333   : > { %v2010_v59 = vpop.f32.mrf.mxu0 }
 0x334   : > { %v2011_v63 = vadd.f32 %v3802_v22, %v2010_v59 }
 0x336   : > { %v2065_v45 = vadd.f32 %v2049_v36, %v2011_v63 }
 0x338   : > { %v2081_v55 = vmax.f32 %v2065_v45, 0.0  ;;  %v2062_v45 = vld [vmem:[%s3355_s0 + $0x70] sm:$0xff] }
 0x33a   : > { %2097 = vst.msk [vmem:[%s3807_s25 + $0x8] sm:$0xff] %vm592_vm0, %v2081_v55 }
 0x33b   : > { %v2013_v3 = vpop.f32.mrf.mxu0 }
 0x33c   : > { %v2014_v25 = vadd.f32 %v3802_v22, %v2013_v3 }
 0x33e   : > { %v2066_v4 = vadd.f32 %v2050_v62, %v2014_v25 }
 0x340   : > { %v2082_v57 = vmax.f32 %v2066_v4, 0.0  ;;  %v2063_v4 = vld [vmem:[%s3355_s0 + $0x78] sm:$0xff] }
 0x342   : > { %2098 = vst.msk [vmem:[%s3807_s25 + $0x10] sm:$0xff] %vm592_vm0, %v2082_v57 }
 0x343   : > { %v2015_v41 = vpop.f32.mrf.mxu0 }
 0x344   : > { %v2016_v2 = vadd.f32 %v3802_v22, %v2015_v41 }
 0x346   : > { %v2067_v51 = vadd.f32 %v2051_v15, %v2016_v2 }
 0x348   : > { %v2083_v5 = vmax.f32 %v2067_v51, 0.0 }
 0x34a   : > { %2099 = vst.msk [vmem:[%s3807_s25 + $0x18] sm:$0xff] %vm592_vm0, %v2083_v5 }
 0x34b   : > { %v2018_v12 = vpop.f32.mrf.mxu0 }
 0x34c   : > { %v2019_v30 = vadd.f32 %v3802_v22, %v2018_v12 }
 0x34e   : > { %v2068_v35 = vadd.f32 %v2052_v54, %v2019_v30 }
 0x350   : > { %v2084_v17 = vmax.f32 %v2068_v35, 0.0 }
 0x352   : > { %2100 = vst.msk [vmem:[%s3807_s25 + $0x20] sm:$0xff] %vm592_vm0, %v2084_v17 }
 0x353   : > { %v2020_v20 = vpop.f32.mrf.mxu0 }
 0x354   : > { %v2021_v31 = vadd.f32 %v3802_v22, %v2020_v20 }
 0x356   : > { %v2069_v21 = vadd.f32 %v2053_v1, %v2021_v31 }
 0x358   : > { %v2085_v61 = vmax.f32 %v2069_v21, 0.0 }
 0x35a   : > { %2101 = vst.msk [vmem:[%s3807_s25 + $0x28] sm:$0xff] %vm592_vm0, %v2085_v61 }
 0x35b   : > { %v2023_v0 = vpop.f32.mrf.mxu0 }
 0x35c   : > { %v2024_v29 = vadd.f32 %v3802_v22, %v2023_v0 }
 0x35e   : > { %v2070_v6 = vadd.f32 %v2054_v37, %v2024_v29 }
 0x360   : > { %v2086_v13 = vmax.f32 %v2070_v6, 0.0 }
 0x362   : > { %2102 = vst.msk [vmem:[%s3807_s25 + $0x30] sm:$0xff] %vm592_vm0, %v2086_v13 }
 0x363   : > { %v2025_v44 = vpop.f32.mrf.mxu0 }
 0x364   : > { %v2026_v40 = vadd.f32 %v3802_v22, %v2025_v44 }
 0x366   : > { %v2071_v27 = vadd.f32 %v2055_v26, %v2026_v40 }
 0x368   : > { %v2087_v42 = vmax.f32 %v2071_v27, 0.0 }
 0x36a   : > { %2103 = vst.msk [vmem:[%s3807_s25 + $0x38] sm:$0xff] %vm592_vm0, %v2087_v42 }
 0x36b   : > { %v2028_v7 = vpop.f32.mrf.mxu0 }
 0x36c   : > { %v2029_v46 = vadd.f32 %v3802_v22, %v2028_v7 }
 0x36e   : > { %v2072_v14 = vadd.f32 %v2056_v19, %v2029_v46 }
 0x370   : > { %v2088_v47 = vmax.f32 %v2072_v14, 0.0 }
 0x372   : > { %2104 = vst.msk [vmem:[%s3807_s25 + $0x40] sm:$0xff] %vm592_vm0, %v2088_v47 }
 0x373   : > { %v2030_v48 = vpop.f32.mrf.mxu0 }
 0x374   : > { %v2031_v60 = vadd.f32 %v3802_v22, %v2030_v48 }
 0x376   : > { %v2073_v49 = vadd.f32 %v2057_v34, %v2031_v60 }
 0x378   : > { %v2089_v18 = vmax.f32 %v2073_v49, 0.0 }
 0x37a   : > { %2105 = vst.msk [vmem:[%s3807_s25 + $0x48] sm:$0xff] %vm592_vm0, %v2089_v18 }
 0x37b   : > { %v2033_v11 = vpop.f32.mrf.mxu0 }
 0x37c   : > { %v2034_v16 = vadd.f32 %v3802_v22, %v2033_v11 }
 0x37e   : > { %v2074_v52 = vadd.f32 %v2058_v43, %v2034_v16 }
 0x380   : > { %v2090_v28 = vmax.f32 %v2074_v52, 0.0 }
 0x382   : > { %2106 = vst.msk [vmem:[%s3807_s25 + $0x50] sm:$0xff] %vm592_vm0, %v2090_v28 }
 0x383   : > { %v2035_v9 = vpop.f32.mrf.mxu0 }
 0x384   : > { %v2036_v24 = vadd.f32 %v3802_v22, %v2035_v9 }
 0x386   : > { %v2075_v23 = vadd.f32 %v2059_v50, %v2036_v24 }
 0x388   : > { %v2091_v33 = vmax.f32 %v2075_v23, 0.0 }
 0x38a   : > { %2107 = vst.msk [vmem:[%s3807_s25 + $0x58] sm:$0xff] %vm592_vm0, %v2091_v33 }
 0x38b   : > { %v2038_v58 = vpop.f32.mrf.mxu0 }
 0x38c   : > { %v2039_v8 = vadd.f32 %v3802_v22, %v2038_v58 }
 0x38e   : > { %v2076_v56 = vadd.f32 %v2060_v32, %v2039_v8 }
 0x390   : > { %v2092_v39 = vmax.f32 %v2076_v56, 0.0 }
 0x392   : > { %2108 = vst.msk [vmem:[%s3807_s25 + $0x60] sm:$0xff] %vm592_vm0, %v2092_v39 }
 0x393   : > { %v2040_v10 = vpop.f32.mrf.mxu0 }
 0x394   : > { %v2041_v53 = vadd.f32 %v3802_v22, %v2040_v10 }
 0x396   : > { %v2077_v59 = vadd.f32 %v2061_v38, %v2041_v53 }
 0x398   : > { %v2093_v36 = vmax.f32 %v2077_v59, 0.0 }
 0x39a   : > { %2109 = vst.msk [vmem:[%s3807_s25 + $0x68] sm:$0xff] %vm592_vm0, %v2093_v36 }
 0x39b   : > { %v2043_v63 = vpop.f32.mrf.mxu0 }
 0x39c   : > { %v2044_v55 = vadd.f32 %v3802_v22, %v2043_v63 }
 0x39e   : > { %v2078_v3 = vadd.f32 %v2062_v45, %v2044_v55 }
 0x3a0   : > { %v2094_v62 = vmax.f32 %v2078_v3, 0.0 }
 0x3a2   : > { %2110 = vst.msk [vmem:[%s3807_s25 + $0x70] sm:$0xff] %vm592_vm0, %v2094_v62 }
 0x3a3   : > { %v2045_v25 = vpop.f32.mrf.mxu0 }
 0x3a4   : > { %v2046_v57 = vadd.f32 %v3802_v22, %v2045_v25 }
 0x3a6   : > { %v2079_v41 = vadd.f32 %v2063_v4, %v2046_v57 }
 0x3a8   : > { %v2095_v15 = vmax.f32 %v2079_v41, 0.0 }
 0x3aa   : > { %2111 = vst.msk [vmem:[%s3807_s25 + $0x78] sm:$0xff] %vm592_vm0, %v2095_v15 }
 0x3ab   : > { %2895 = shalt.err (!%p2892_p5)
}
 0x3ac   : > { %s3040_s5 = smov 128   ;;  %s3041_s28 = smov 8  }
 0x3ad   : > { %2527 = dma.vmem_to_hbm [thread:$0]  (%p3217_p2), %s2129_s4, 2048, %s2131_s24, %s2113_s19, %s3040_s5, %s3040_s5, %s3041_s28  }
 0x3ae PF: > { %s4034_s25 = sld [smem:[#allocation23_spill]]  ;;  %p2560_p12 = scmp.ge.s32.totalorder %s3030_s22, 2 }
 0x3b0   : > { %p2550_p7 = pnand %p2560_p12, %p3225_p4 }
 0x3b2   : > { %p2551_p9 = pneg %p2550_p7 }
 0x3b4   : > { %s2145_s3 = sand.u32 1, %s4034_s25  }
 0x3b5   : > { %s2146_s7 = scalar_lea.sflag [#allocation5], %s2145_s3 }
 0x3b6   : > { %2973 = dma.done.wait (%p2551_p9), %s2146_s7, 2048  }
 0x3b7   : > { %2975 = vsyncadd (%p2551_p9), %s2146_s7, 4294965248  ;;  %s30_s22 = sadd.s32 1, %s3030_s22   ;;  %s4037_s30 = sld [smem:[#allocation22_spill]] }
 0x3b8   : > { %p3894_p1 = scmp.ge.s32.totalorder %s30_s22, 6   ;;  %s4038_s18 = sld [smem:[#allocation24_spill]] }
 0x3b9   : > { %s4039_s9 = sld [smem:[#allocation34_spill]]  ;;  %s4044_s10 = smov %s2986_s11 }
 0x3ba   : > { %s4040_s19 = sld [smem:[#allocation27_spill]]  ;;  %s4045_s11 = smov %s3327_s29 }
 0x3bb   : > { %s4041_s23 = sld [smem:[#allocation29_spill]]  ;;  %s4047_s13 = smov %s2998_s14 }
 0x3bc   : > { %s4042_s21 = sld [smem:[#allocation30_spill]]  ;;  %s4049_s15 = smov %s3006_s16 }
 0x3bd   : > { %s4050_s16 = smov %s3010_s17  ;;  %s4051_s17 = smov %s3291_s26 }
 0x3be   : > { %s4046_s12 = smov %s4038_s18  ;;  %s4052_s18 = smov %s3022_s20 }
 0x3bf   : > { %s4048_s14 = smov %s4039_s9  ;;  %29 = sbr.rel (!%p3894_p1) target bundleno = 25 (0x19), region = 148 }
 0x3c1   : > { %s4053_s20 = smov %s4041_s23 }
 0x3c4   :  { %2152 = vsyncpa [#allocation4], 1 }
 0x3c5   :  { %2154 = vsyncpa [#allocation4 + $0x1], 1 }
 0x3c6   :  { %2155 = vsyncpa [#allocation7], 1 }
 0x3c7   :  { %2157 = vsyncpa [#allocation7 + $0x1], 1 }
 0x3c8   :  { %2158 = vsyncpa [#allocation10], 1 }
 0x3c9   :  { %2159 = vsyncpa [#allocation13], 1 }
 0x3ca   :  { %2160 = vsyncpa [#allocation5], 1 }
 0x3cb   :  { %2162 = vsyncpa [#allocation5 + $0x1], 1 }

</bundles_post_ra>
